<compile_context>
chip_gen: v5e
topology: v5e:2x2
jax: 0.10.0
libtpu: 0.0.40
codegen_flags: <defaults>
</compile_context>

<pallas_src>
import functools

import jax
import jax.numpy as jnp
from jax import lax
from jax.experimental import pallas as pl
from jax.experimental.pallas import tpu as pltpu


_TAPS = tuple((di, dj) for di in (-1, 0, 1) for dj in (-1, 0, 1))  # tap t = (di+1)*3+(dj+1)


# ----------------------------- Pallas kernel ------------------------------- #

def _dsc_kernel(x_ref, mask_ref, wout_ref, bout_ref, w1_ref, b1_ref,
                w2_ref, b2_ref, out_ref, g1_ref, g2_ref, *, H, W, Cin, B0, Lg):
    # x_ref    : VMEM (1, Cin, HW)    one sample, spatial flattened (lane-dense)
    # mask_ref : VMEM (2, HW)         [0] = dj=+1 valid mask, [1] = dj=-1 valid mask
    # wout_ref : VMEM (Cin, 1)        1x1 conv weights (column)
    # bout_ref : SMEM (1,)            1x1 conv bias
    # w1_ref   : VMEM (Cin, 9)        conv1 3x3 weights [co, tap], BN1 folded
    # b1_ref   : VMEM (Cin, 1)        conv1 bias, BN1 folded
    # w2_ref   : VMEM (9, Cin, Cin)   conv2 3x3 weights [tap, co, ci], BN2 folded
    # b2_ref   : VMEM (Cin, 1)        conv2 bias, BN2 folded
    # out_ref  : VMEM (1, 2*Cin, HW)  concat([x, diff])
    # g1_ref   : VMEM (1, Lg)         zero-margined flat plane (conv1 input)
    # g2_ref   : VMEM (Cin, Lg)       zero-margined flat planes (conv2 input)
    HW = H * W
    m_pos = mask_ref[0:1, :]        # kills horizontal wrap of dj = +1 taps
    m_neg = mask_ref[1:2, :]        # kills horizontal wrap of dj = -1 taps

    # Re-zero ONLY the halo margins (payload is fully overwritten below).  Cheap, and
    # correct regardless of which core executes which grid indices.
    g1_ref[0:1, 0:B0] = jnp.zeros((1, B0), jnp.float32)
    g1_ref[0:1, B0 + HW:Lg] = jnp.zeros((1, Lg - B0 - HW), jnp.float32)
    g2_ref[:, 0:B0] = jnp.zeros((Cin, B0), jnp.float32)
    g2_ref[:, B0 + HW:Lg] = jnp.zeros((Cin, Lg - B0 - HW), jnp.float32)

    # ---- stage 1: copy x -> out[:Cin]; 1x1 conv (Cin->1) + sigmoid + 1-|.-0.5| ----
    x_slab = x_ref[0]                                         # (Cin, HW)
    out_ref[0, 0:Cin, :] = x_slab                             # first half of the concat
    pre = jnp.sum(x_slab * wout_ref[...], axis=0, keepdims=True) + bout_ref[0]
    d = 1.0 - jnp.abs(jax.nn.sigmoid(pre) - 0.5)              # (1, HW)
    g1_ref[0:1, B0:B0 + HW] = d

    # ---- stage 2: conv3x3 (1 -> Cin) + BN + ReLU as one (Cin,9) @ (9,HW) matmul ----
    rows = []
    for di, dj in _TAPS:
        s = B0 + di * W + dj
        v = g1_ref[0:1, s:s + HW]
        if dj == 1:
            v = v * m_pos
        elif dj == -1:
            v = v * m_neg
        rows.append(v)
    tap_stack = jnp.concatenate(rows, axis=0)                 # (9, HW)
    h1 = jnp.dot(w1_ref[...], tap_stack,
                 preferred_element_type=jnp.float32,
                 precision=jax.lax.Precision.HIGHEST)         # (Cin, HW) on the MXU
    g2_ref[:, B0:B0 + HW] = jnp.maximum(h1 + b1_ref[...], 0.0)

    # ---- stage 3: conv3x3 (Cin -> Cin) + BN + ReLU: 9 per-tap (Cin,Cin)@(Cin,HW) ----
    acc = jnp.zeros((Cin, HW), jnp.float32)
    for t, (di, dj) in enumerate(_TAPS):
        s = B0 + di * W + dj
        slab = g2_ref[:, s:s + HW]                            # (Cin, HW) all channels
        if dj == 1:
            slab = slab * m_pos
        elif dj == -1:
            slab = slab * m_neg
        acc = acc + jnp.dot(w2_ref[t], slab,
                            preferred_element_type=jnp.float32,
                            precision=jax.lax.Precision.HIGHEST)
    out_ref[0, Cin:2 * Cin, :] = jnp.maximum(acc + b2_ref[...], 0.0)


# ------------------------------ Host wrapper ------------------------------- #

def dsc_forward(x, params):
    N, Cin, H, W = x.shape
    HW = H * W
    eps = 1e-5

    # Fold eval-mode BatchNorm into the conv weights / biases.
    s1 = params["bn1_g"] / jnp.sqrt(params["bn1_v"] + eps)
    w1_eff = params["c1_w"] * s1[:, None, None, None]                  # (Cin, 1, 3, 3)
    b1_eff = (params["c1_b"] - params["bn1_m"]) * s1 + params["bn1_b"]
    s2 = params["bn2_g"] / jnp.sqrt(params["bn2_v"] + eps)
    w2_eff = params["c2_w"] * s2[:, None, None, None]                  # (Cin, Cin, 3, 3)
    b2_eff = (params["c2_b"] - params["bn2_m"]) * s2 + params["bn2_b"]

    wout = params["out_w"].reshape(Cin, 1)                             # (1,Cin,1,1) -> column
    bout = params["out_b"].reshape(1)
    w1_mat = w1_eff.reshape(Cin, 9)                                    # [co, tap]
    b1_col = b1_eff.reshape(Cin, 1)
    w2_mat = jnp.transpose(w2_eff, (2, 3, 0, 1)).reshape(9, Cin, Cin)  # [tap, co, ci]
    b2_col = b2_eff.reshape(Cin, 1)

    # Flat zero-margined plane geometry: 128-aligned payload offset, 128-rounded length.
    B0 = -(-(W + 1) // 128) * 128
    Lg = -(-(B0 + HW + W + 1) // 128) * 128

    # Wrap-around masks for the dj = +/-1 taps, built once on the host.
    col = jnp.arange(HW, dtype=jnp.int32) % W
    masks = jnp.stack([(col != (W - 1)).astype(jnp.float32),
                       (col != 0).astype(jnp.float32)], axis=0)        # (2, HW)

    x_flat = x.reshape(N, Cin, HW)                                     # lane-dense blocks

    # VMEM budget: double-buffered blocks + weights + resident scratch, plus headroom.
    blk_bytes = 4 * (Cin * HW + 2 * Cin * HW + 2 * HW
                     + Cin + Cin * 9 + Cin + 9 * Cin * Cin + Cin)
    scratch_bytes = 4 * (Lg + Cin * Lg)
    vmem_limit = int(min(100 * 1024 * 1024,
                         max(32 * 1024 * 1024, 2 * blk_bytes + scratch_bytes + (4 << 20))))

    smem = pl.BlockSpec(memory_space=pltpu.MemorySpace.SMEM)
    kernel = functools.partial(_dsc_kernel, H=H, W=W, Cin=Cin, B0=B0, Lg=Lg)

    out_flat = pl.pallas_call(
        kernel,
        out_shape=jax.ShapeDtypeStruct((N, 2 * Cin, HW), jnp.float32),
        grid=(N,),
        in_specs=[
            pl.BlockSpec((1, Cin, HW), lambda n: (n, 0, 0)),           # x
            pl.BlockSpec((2, HW), lambda n: (0, 0)),                   # wrap masks
            pl.BlockSpec((Cin, 1), lambda n: (0, 0)),                  # wout
            smem,                                                      # bout
            pl.BlockSpec((Cin, 9), lambda n: (0, 0)),                  # w1 (BN folded)
            pl.BlockSpec((Cin, 1), lambda n: (0, 0)),                  # b1
            pl.BlockSpec((9, Cin, Cin), lambda n: (0, 0, 0)),          # w2 (BN folded)
            pl.BlockSpec((Cin, 1), lambda n: (0, 0)),                  # b2
        ],
        out_specs=pl.BlockSpec((1, 2 * Cin, HW), lambda n: (n, 0, 0)),
        scratch_shapes=[
            pltpu.VMEM((1, Lg), jnp.float32),     # zero-margined plane for conv1 input
            pltpu.VMEM((Cin, Lg), jnp.float32),   # zero-margined planes for conv2 input
        ],
        compiler_params=pltpu.CompilerParams(
            dimension_semantics=("parallel",),    # batch axis -> both TCs on v7x
            vmem_limit_bytes=vmem_limit,
        ),
    )(x_flat, masks, wout, bout, w1_mat, b1_col, w2_mat, b2_col)
    return out_flat.reshape(N, 2 * Cin, H, W)


# ------------------------- pure-JAX reference ------------------------------ #

def dsc_reference(x, params):
    eps = 1e-5
    diff = jnp.einsum("nchw,oc->nohw", x, params["out_w"][:, :, 0, 0])
    diff = diff + params["out_b"][None, :, None, None]
    diff = jax.nn.sigmoid(diff)
    diff = 1.0 - jnp.abs(diff - 0.5)

    def conv_bn_relu(inp, w, b, g, be, m, v):
        y = lax.conv_general_dilated(
            inp, w, (1, 1), ((1, 1), (1, 1)),
            dimension_numbers=("NCHW", "OIHW", "NCHW"))
        y = y + b[None, :, None, None]
        y = (y - m[None, :, None, None]) / jnp.sqrt(v[None, :, None, None] + eps)
        y = y * g[None, :, None, None] + be[None, :, None, None]
        return jnp.maximum(y, 0.0)

    h = conv_bn_relu(diff, params["c1_w"], params["c1_b"], params["bn1_g"],
                     params["bn1_b"], params["bn1_m"], params["bn1_v"])
    h = conv_bn_relu(h, params["c2_w"], params["c2_b"], params["bn2_g"],
                     params["bn2_b"], params["bn2_m"], params["bn2_v"])
    return jnp.concatenate([x, h], axis=1)


def init_params(key, c_in):
    ks = jax.random.split(key, 16)
    f = lambda k, s, scale=0.3: (scale * jax.random.normal(k, s)).astype(jnp.float32)
    return {
        # nn.Conv2d(c_in, 1, kernel_size=(1, 1))
        "out_w": f(ks[0], (1, c_in, 1, 1)),
        "out_b": f(ks[1], (1,)),
        # ConvBatchNorm(1 -> c_in, ReLU)
        "c1_w": f(ks[2], (c_in, 1, 3, 3)),
        "c1_b": f(ks[3], (c_in,)),
        "bn1_g": 1.0 + f(ks[4], (c_in,), 0.1),
        "bn1_b": f(ks[5], (c_in,), 0.1),
        "bn1_m": f(ks[6], (c_in,), 0.1),
        "bn1_v": jax.random.uniform(ks[7], (c_in,), minval=0.5, maxval=1.5).astype(jnp.float32),
        # ConvBatchNorm(c_in -> c_in, ReLU)
        "c2_w": f(ks[8], (c_in, c_in, 3, 3)),
        "c2_b": f(ks[9], (c_in,)),
        "bn2_g": 1.0 + f(ks[10], (c_in,), 0.1),
        "bn2_b": f(ks[11], (c_in,), 0.1),
        "bn2_m": f(ks[12], (c_in,), 0.1),
        "bn2_v": jax.random.uniform(ks[13], (c_in,), minval=0.5, maxval=1.5).astype(jnp.float32),
    }


if __name__ == "__main__":
    key = jax.random.PRNGKey(0)
    kx, kp = jax.random.split(key, 2)
    N, Cin, H, W = 2, 4, 16, 16
    x = jax.random.normal(kx, (N, Cin, H, W), jnp.float32)
    params = init_params(kp, Cin)

    out = jax.block_until_ready(dsc_forward(x, params))
    ref = jax.block_until_ready(dsc_reference(x, params))
    assert out.shape == (N, 2 * Cin, H, W), out.shape
    if not jnp.allclose(out, ref, atol=2e-4, rtol=2e-4):
        raise AssertionError(
            f"mismatch vs reference, max abs err = {float(jnp.max(jnp.abs(out - ref)))}")
    print("KERNEL_OK")
</pallas_src>

<mosaic_0001>
module attributes {stable_mosaic.version = 11 : i64} {
  func.func @_dsc_kernel(%arg0: i32, %arg1: memref<1x4x256xf32, #tpu.memory_space<vmem>>, %arg2: memref<2x256xf32, #tpu.memory_space<vmem>>, %arg3: memref<4x1xf32, #tpu.memory_space<vmem>>, %arg4: memref<1xf32, #tpu.memory_space<smem>>, %arg5: memref<4x9xf32, #tpu.memory_space<vmem>>, %arg6: memref<4x1xf32, #tpu.memory_space<vmem>>, %arg7: memref<9x4x4xf32, #tpu.memory_space<vmem>>, %arg8: memref<4x1xf32, #tpu.memory_space<vmem>>, %arg9: memref<1x8x256xf32, #tpu.memory_space<vmem>>, %arg10: memref<1x512xf32, #tpu.memory_space<vmem>>, %arg11: memref<4x512xf32, #tpu.memory_space<vmem>>) attributes {dimension_semantics = [#tpu.dimension_semantics<parallel>], iteration_bounds = array<i64: 2>, scalar_prefetch = 0 : i64, scratch_operands = 2 : i64, tpu.core_type = #tpu.core_type<tc>, window_params = [{transform_indices = @transform_0, window_bounds = array<i64: 1, 4, 256>}, {pipeline_mode = #tpu.pipeline_mode<synchronous>, transform_indices = @transform_1, window_bounds = array<i64: 2, 256>}, {pipeline_mode = #tpu.pipeline_mode<synchronous>, transform_indices = @transform_2, window_bounds = array<i64: 4, 1>}, {transform_indices = @transform_3, window_bounds = array<i64: 1>}, {pipeline_mode = #tpu.pipeline_mode<synchronous>, transform_indices = @transform_4, window_bounds = array<i64: 4, 9>}, {pipeline_mode = #tpu.pipeline_mode<synchronous>, transform_indices = @transform_5, window_bounds = array<i64: 4, 1>}, {pipeline_mode = #tpu.pipeline_mode<synchronous>, transform_indices = @transform_6, window_bounds = array<i64: 9, 4, 4>}, {pipeline_mode = #tpu.pipeline_mode<synchronous>, transform_indices = @transform_7, window_bounds = array<i64: 4, 1>}, {transform_indices = @transform_8, window_bounds = array<i64: 1, 8, 256>}]} {
    %c0 = arith.constant 0 : index
    %c0_0 = arith.constant 0 : index
    %0 = vector.load %arg2[%c0, %c0_0] : memref<2x256xf32, #tpu.memory_space<vmem>>, vector<1x256xf32>
    %c1 = arith.constant 1 : index
    %c0_1 = arith.constant 0 : index
    %1 = vector.load %arg2[%c1, %c0_1] : memref<2x256xf32, #tpu.memory_space<vmem>>, vector<1x256xf32>
    %cst = arith.constant 0.000000e+00 : f32
    %2 = vector.broadcast %cst : f32 to vector<1x128xf32>
    %c0_2 = arith.constant 0 : index
    %c0_3 = arith.constant 0 : index
    %3 = vector.load %arg10[%c0_2, %c0_3] : memref<1x512xf32, #tpu.memory_space<vmem>>, vector<1x128xf32>
    tpu.vector_store %arg10[%c0_2, %c0_3], %2 {strides = array<i32>} : memref<1x512xf32, #tpu.memory_space<vmem>>, vector<1x128xf32>,
    %cst_4 = arith.constant 0.000000e+00 : f32
    %4 = vector.broadcast %cst_4 : f32 to vector<1x128xf32>
    %c0_5 = arith.constant 0 : index
    %c384 = arith.constant 384 : index
    %5 = vector.load %arg10[%c0_5, %c384] : memref<1x512xf32, #tpu.memory_space<vmem>>, vector<1x128xf32>
    tpu.vector_store %arg10[%c0_5, %c384], %4 {strides = array<i32>} : memref<1x512xf32, #tpu.memory_space<vmem>>, vector<1x128xf32>,
    %cst_6 = arith.constant 0.000000e+00 : f32
    %6 = vector.broadcast %cst_6 : f32 to vector<4x128xf32>
    %c0_7 = arith.constant 0 : index
    %c0_8 = arith.constant 0 : index
    %7 = vector.load %arg11[%c0_7, %c0_8] : memref<4x512xf32, #tpu.memory_space<vmem>>, vector<4x128xf32>
    tpu.vector_store %arg11[%c0_7, %c0_8], %6 {strides = array<i32>} : memref<4x512xf32, #tpu.memory_space<vmem>>, vector<4x128xf32>,
    %cst_9 = arith.constant 0.000000e+00 : f32
    %8 = vector.broadcast %cst_9 : f32 to vector<4x128xf32>
    %c0_10 = arith.constant 0 : index
    %c384_11 = arith.constant 384 : index
    %9 = vector.load %arg11[%c0_10, %c384_11] : memref<4x512xf32, #tpu.memory_space<vmem>>, vector<4x128xf32>
    tpu.vector_store %arg11[%c0_10, %c384_11], %8 {strides = array<i32>} : memref<4x512xf32, #tpu.memory_space<vmem>>, vector<4x128xf32>,
    %c0_12 = arith.constant 0 : index
    %c0_13 = arith.constant 0 : index
    %c0_14 = arith.constant 0 : index
    %10 = vector.load %arg1[%c0_12, %c0_13, %c0_14] : memref<1x4x256xf32, #tpu.memory_space<vmem>>, vector<1x4x256xf32>
    %11 = vector.shape_cast %10 : vector<1x4x256xf32> to vector<4x256xf32>
    %c0_15 = arith.constant 0 : index
    %c0_16 = arith.constant 0 : index
    %c0_17 = arith.constant 0 : index
    %12 = vector.load %arg9[%c0_15, %c0_16, %c0_17] : memref<1x8x256xf32, #tpu.memory_space<vmem>>, vector<1x4x256xf32>
    %13 = vector.shape_cast %12 : vector<1x4x256xf32> to vector<4x256xf32>
    %14 = vector.shape_cast %11 : vector<4x256xf32> to vector<1x4x256xf32>
    tpu.vector_store %arg9[%c0_15, %c0_16, %c0_17], %14 {strides = array<i32>} : memref<1x8x256xf32, #tpu.memory_space<vmem>>, vector<1x4x256xf32>,
    %c0_18 = arith.constant 0 : index
    %c0_19 = arith.constant 0 : index
    %15 = vector.load %arg3[%c0_18, %c0_19] : memref<4x1xf32, #tpu.memory_space<vmem>>, vector<4x1xf32>
    %16 = vector.broadcast %15 : vector<4x1xf32> to vector<4x256xf32>
    %17 = arith.mulf %11, %16 : vector<4x256xf32>
    %cst_20 = arith.constant dense<0.000000e+00> : vector<256xf32>
    %18 = vector.multi_reduction <add>, %17, %cst_20 [0] : vector<4x256xf32> to vector<256xf32>
    %19 = vector.shape_cast %18 : vector<256xf32> to vector<1x256xf32>
    %c0_21 = arith.constant 0 : index
    %20 = memref.load %arg4[%c0_21] : memref<1xf32, #tpu.memory_space<smem>>
    %21 = vector.broadcast %20 : f32 to vector<1x256xf32>
    %22 = arith.addf %19, %21 : vector<1x256xf32>
    %23 = arith.negf %22 : vector<1x256xf32>
    %24 = math.exp %23 : vector<1x256xf32>
    %cst_22 = arith.constant 1.000000e+00 : f32
    %25 = vector.broadcast %cst_22 : f32 to vector<1x256xf32>
    %26 = arith.addf %25, %24 : vector<1x256xf32>
    %27 = arith.divf %25, %26 : vector<1x256xf32>
    %cst_23 = arith.constant 5.000000e-01 : f32
    %28 = vector.broadcast %cst_23 : f32 to vector<1x256xf32>
    %29 = arith.subf %27, %28 : vector<1x256xf32>
    %30 = math.absf %29 : vector<1x256xf32>
    %cst_24 = arith.constant 1.000000e+00 : f32
    %31 = vector.broadcast %cst_24 : f32 to vector<1x256xf32>
    %32 = arith.subf %31, %30 : vector<1x256xf32>
    %c0_25 = arith.constant 0 : index
    %c128 = arith.constant 128 : index
    %33 = vector.load %arg10[%c0_25, %c128] : memref<1x512xf32, #tpu.memory_space<vmem>>, vector<1x256xf32>
    tpu.vector_store %arg10[%c0_25, %c128], %32 {strides = array<i32>} : memref<1x512xf32, #tpu.memory_space<vmem>>, vector<1x256xf32>,
    %c0_26 = arith.constant 0 : index
    %c111 = arith.constant 111 : index
    %34 = vector.load %arg10[%c0_26, %c111] : memref<1x512xf32, #tpu.memory_space<vmem>>, vector<1x256xf32>
    %35 = arith.mulf %34, %1 : vector<1x256xf32>
    %c0_27 = arith.constant 0 : index
    %c112 = arith.constant 112 : index
    %36 = vector.load %arg10[%c0_27, %c112] : memref<1x512xf32, #tpu.memory_space<vmem>>, vector<1x256xf32>
    %c0_28 = arith.constant 0 : index
    %c113 = arith.constant 113 : index
    %37 = vector.load %arg10[%c0_28, %c113] : memref<1x512xf32, #tpu.memory_space<vmem>>, vector<1x256xf32>
    %38 = arith.mulf %37, %0 : vector<1x256xf32>
    %c0_29 = arith.constant 0 : index
    %c127 = arith.constant 127 : index
    %39 = vector.load %arg10[%c0_29, %c127] : memref<1x512xf32, #tpu.memory_space<vmem>>, vector<1x256xf32>
    %40 = arith.mulf %39, %1 : vector<1x256xf32>
    %c0_30 = arith.constant 0 : index
    %c128_31 = arith.constant 128 : index
    %41 = vector.load %arg10[%c0_30, %c128_31] : memref<1x512xf32, #tpu.memory_space<vmem>>, vector<1x256xf32>
    %c0_32 = arith.constant 0 : index
    %c129 = arith.constant 129 : index
    %42 = vector.load %arg10[%c0_32, %c129] : memref<1x512xf32, #tpu.memory_space<vmem>>, vector<1x256xf32>
    %43 = arith.mulf %42, %0 : vector<1x256xf32>
    %c0_33 = arith.constant 0 : index
    %c143 = arith.constant 143 : index
    %44 = vector.load %arg10[%c0_33, %c143] : memref<1x512xf32, #tpu.memory_space<vmem>>, vector<1x256xf32>
    %45 = arith.mulf %44, %1 : vector<1x256xf32>
    %c0_34 = arith.constant 0 : index
    %c144 = arith.constant 144 : index
    %46 = vector.load %arg10[%c0_34, %c144] : memref<1x512xf32, #tpu.memory_space<vmem>>, vector<1x256xf32>
    %c0_35 = arith.constant 0 : index
    %c145 = arith.constant 145 : index
    %47 = vector.load %arg10[%c0_35, %c145] : memref<1x512xf32, #tpu.memory_space<vmem>>, vector<1x256xf32>
    %48 = arith.mulf %47, %0 : vector<1x256xf32>
    %49 = tpu.concatenate %35, %36, %38, %40, %41, %43, %45, %46, %48 in 0 : vector<1x256xf32>, vector<1x256xf32>, vector<1x256xf32>, vector<1x256xf32>, vector<1x256xf32>, vector<1x256xf32>, vector<1x256xf32>, vector<1x256xf32>, vector<1x256xf32> -> vector<9x256xf32>
    %c0_36 = arith.constant 0 : index
    %c0_37 = arith.constant 0 : index
    %50 = vector.load %arg5[%c0_36, %c0_37] : memref<4x9xf32, #tpu.memory_space<vmem>>, vector<4x9xf32>
    %cst_38 = arith.constant dense<0.000000e+00> : vector<4x256xf32>
    %51 = tpu.matmul %50, %49, %cst_38 {dimension_numbers = #tpu.dot_dimension_numbers<[1], [0], [0], [1], [0, 0, 1, 1], [], []>, precision = #tpu.contract_precision<fp32>} : vector<4x9xf32>, vector<9x256xf32>, vector<4x256xf32> -> vector<4x256xf32>
    %c0_39 = arith.constant 0 : index
    %c0_40 = arith.constant 0 : index
    %52 = vector.load %arg6[%c0_39, %c0_40] : memref<4x1xf32, #tpu.memory_space<vmem>>, vector<4x1xf32>
    %53 = vector.broadcast %52 : vector<4x1xf32> to vector<4x256xf32>
    %54 = arith.addf %51, %53 : vector<4x256xf32>
    %cst_41 = arith.constant 0.000000e+00 : f32
    %55 = vector.broadcast %cst_41 : f32 to vector<4x256xf32>
    %56 = arith.maximumf %54, %55 : vector<4x256xf32>
    %c0_42 = arith.constant 0 : index
    %c128_43 = arith.constant 128 : index
    %57 = vector.load %arg11[%c0_42, %c128_43] : memref<4x512xf32, #tpu.memory_space<vmem>>, vector<4x256xf32>
    tpu.vector_store %arg11[%c0_42, %c128_43], %56 {strides = array<i32>} : memref<4x512xf32, #tpu.memory_space<vmem>>, vector<4x256xf32>,
    %cst_44 = arith.constant 0.000000e+00 : f32
    %58 = vector.broadcast %cst_44 : f32 to vector<4x256xf32>
    %c0_45 = arith.constant 0 : index
    %c111_46 = arith.constant 111 : index
    %59 = vector.load %arg11[%c0_45, %c111_46] : memref<4x512xf32, #tpu.memory_space<vmem>>, vector<4x256xf32>
    %60 = vector.broadcast %1 : vector<1x256xf32> to vector<4x256xf32>
    %61 = arith.mulf %59, %60 : vector<4x256xf32>
    %c0_47 = arith.constant 0 : index
    %c0_48 = arith.constant 0 : index
    %c0_49 = arith.constant 0 : index
    %62 = vector.load %arg7[%c0_47, %c0_48, %c0_49] : memref<9x4x4xf32, #tpu.memory_space<vmem>>, vector<1x4x4xf32>
    %63 = vector.shape_cast %62 : vector<1x4x4xf32> to vector<4x4xf32>
    %cst_50 = arith.constant dense<0.000000e+00> : vector<4x256xf32>
    %64 = tpu.matmul %63, %61, %cst_50 {dimension_numbers = #tpu.dot_dimension_numbers<[1], [0], [0], [1], [0, 0, 1, 1], [], []>, precision = #tpu.contract_precision<fp32>} : vector<4x4xf32>, vector<4x256xf32>, vector<4x256xf32> -> vector<4x256xf32>
    %65 = arith.addf %58, %64 : vector<4x256xf32>
    %c0_51 = arith.constant 0 : index
    %c112_52 = arith.constant 112 : index
    %66 = vector.load %arg11[%c0_51, %c112_52] : memref<4x512xf32, #tpu.memory_space<vmem>>, vector<4x256xf32>
    %c1_53 = arith.constant 1 : index
    %c0_54 = arith.constant 0 : index
    %c0_55 = arith.constant 0 : index
    %67 = vector.load %arg7[%c1_53, %c0_54, %c0_55] : memref<9x4x4xf32, #tpu.memory_space<vmem>>, vector<1x4x4xf32>
    %68 = vector.shape_cast %67 : vector<1x4x4xf32> to vector<4x4xf32>
    %cst_56 = arith.constant dense<0.000000e+00> : vector<4x256xf32>
    %69 = tpu.matmul %68, %66, %cst_56 {dimension_numbers = #tpu.dot_dimension_numbers<[1], [0], [0], [1], [0, 0, 1, 1], [], []>, precision = #tpu.contract_precision<fp32>} : vector<4x4xf32>, vector<4x256xf32>, vector<4x256xf32> -> vector<4x256xf32>
    %70 = arith.addf %65, %69 : vector<4x256xf32>
    %c0_57 = arith.constant 0 : index
    %c113_58 = arith.constant 113 : index
    %71 = vector.load %arg11[%c0_57, %c113_58] : memref<4x512xf32, #tpu.memory_space<vmem>>, vector<4x256xf32>
    %72 = vector.broadcast %0 : vector<1x256xf32> to vector<4x256xf32>
    %73 = arith.mulf %71, %72 : vector<4x256xf32>
    %c2 = arith.constant 2 : index
    %c0_59 = arith.constant 0 : index
    %c0_60 = arith.constant 0 : index
    %74 = vector.load %arg7[%c2, %c0_59, %c0_60] : memref<9x4x4xf32, #tpu.memory_space<vmem>>, vector<1x4x4xf32>
    %75 = vector.shape_cast %74 : vector<1x4x4xf32> to vector<4x4xf32>
    %cst_61 = arith.constant dense<0.000000e+00> : vector<4x256xf32>
    %76 = tpu.matmul %75, %73, %cst_61 {dimension_numbers = #tpu.dot_dimension_numbers<[1], [0], [0], [1], [0, 0, 1, 1], [], []>, precision = #tpu.contract_precision<fp32>} : vector<4x4xf32>, vector<4x256xf32>, vector<4x256xf32> -> vector<4x256xf32>
    %77 = arith.addf %70, %76 : vector<4x256xf32>
    %c0_62 = arith.constant 0 : index
    %c127_63 = arith.constant 127 : index
    %78 = vector.load %arg11[%c0_62, %c127_63] : memref<4x512xf32, #tpu.memory_space<vmem>>, vector<4x256xf32>
    %79 = vector.broadcast %1 : vector<1x256xf32> to vector<4x256xf32>
    %80 = arith.mulf %78, %79 : vector<4x256xf32>
    %c3 = arith.constant 3 : index
    %c0_64 = arith.constant 0 : index
    %c0_65 = arith.constant 0 : index
    %81 = vector.load %arg7[%c3, %c0_64, %c0_65] : memref<9x4x4xf32, #tpu.memory_space<vmem>>, vector<1x4x4xf32>
    %82 = vector.shape_cast %81 : vector<1x4x4xf32> to vector<4x4xf32>
    %cst_66 = arith.constant dense<0.000000e+00> : vector<4x256xf32>
    %83 = tpu.matmul %82, %80, %cst_66 {dimension_numbers = #tpu.dot_dimension_numbers<[1], [0], [0], [1], [0, 0, 1, 1], [], []>, precision = #tpu.contract_precision<fp32>} : vector<4x4xf32>, vector<4x256xf32>, vector<4x256xf32> -> vector<4x256xf32>
    %84 = arith.addf %77, %83 : vector<4x256xf32>
    %c0_67 = arith.constant 0 : index
    %c128_68 = arith.constant 128 : index
    %85 = vector.load %arg11[%c0_67, %c128_68] : memref<4x512xf32, #tpu.memory_space<vmem>>, vector<4x256xf32>
    %c4 = arith.constant 4 : index
    %c0_69 = arith.constant 0 : index
    %c0_70 = arith.constant 0 : index
    %86 = vector.load %arg7[%c4, %c0_69, %c0_70] : memref<9x4x4xf32, #tpu.memory_space<vmem>>, vector<1x4x4xf32>
    %87 = vector.shape_cast %86 : vector<1x4x4xf32> to vector<4x4xf32>
    %cst_71 = arith.constant dense<0.000000e+00> : vector<4x256xf32>
    %88 = tpu.matmul %87, %85, %cst_71 {dimension_numbers = #tpu.dot_dimension_numbers<[1], [0], [0], [1], [0, 0, 1, 1], [], []>, precision = #tpu.contract_precision<fp32>} : vector<4x4xf32>, vector<4x256xf32>, vector<4x256xf32> -> vector<4x256xf32>
    %89 = arith.addf %84, %88 : vector<4x256xf32>
    %c0_72 = arith.constant 0 : index
    %c129_73 = arith.constant 129 : index
    %90 = vector.load %arg11[%c0_72, %c129_73] : memref<4x512xf32, #tpu.memory_space<vmem>>, vector<4x256xf32>
    %91 = vector.broadcast %0 : vector<1x256xf32> to vector<4x256xf32>
    %92 = arith.mulf %90, %91 : vector<4x256xf32>
    %c5 = arith.constant 5 : index
    %c0_74 = arith.constant 0 : index
    %c0_75 = arith.constant 0 : index
    %93 = vector.load %arg7[%c5, %c0_74, %c0_75] : memref<9x4x4xf32, #tpu.memory_space<vmem>>, vector<1x4x4xf32>
    %94 = vector.shape_cast %93 : vector<1x4x4xf32> to vector<4x4xf32>
    %cst_76 = arith.constant dense<0.000000e+00> : vector<4x256xf32>
    %95 = tpu.matmul %94, %92, %cst_76 {dimension_numbers = #tpu.dot_dimension_numbers<[1], [0], [0], [1], [0, 0, 1, 1], [], []>, precision = #tpu.contract_precision<fp32>} : vector<4x4xf32>, vector<4x256xf32>, vector<4x256xf32> -> vector<4x256xf32>
    %96 = arith.addf %89, %95 : vector<4x256xf32>
    %c0_77 = arith.constant 0 : index
    %c143_78 = arith.constant 143 : index
    %97 = vector.load %arg11[%c0_77, %c143_78] : memref<4x512xf32, #tpu.memory_space<vmem>>, vector<4x256xf32>
    %98 = vector.broadcast %1 : vector<1x256xf32> to vector<4x256xf32>
    %99 = arith.mulf %97, %98 : vector<4x256xf32>
    %c6 = arith.constant 6 : index
    %c0_79 = arith.constant 0 : index
    %c0_80 = arith.constant 0 : index
    %100 = vector.load %arg7[%c6, %c0_79, %c0_80] : memref<9x4x4xf32, #tpu.memory_space<vmem>>, vector<1x4x4xf32>
    %101 = vector.shape_cast %100 : vector<1x4x4xf32> to vector<4x4xf32>
    %cst_81 = arith.constant dense<0.000000e+00> : vector<4x256xf32>
    %102 = tpu.matmul %101, %99, %cst_81 {dimension_numbers = #tpu.dot_dimension_numbers<[1], [0], [0], [1], [0, 0, 1, 1], [], []>, precision = #tpu.contract_precision<fp32>} : vector<4x4xf32>, vector<4x256xf32>, vector<4x256xf32> -> vector<4x256xf32>
    %103 = arith.addf %96, %102 : vector<4x256xf32>
    %c0_82 = arith.constant 0 : index
    %c144_83 = arith.constant 144 : index
    %104 = vector.load %arg11[%c0_82, %c144_83] : memref<4x512xf32, #tpu.memory_space<vmem>>, vector<4x256xf32>
    %c7 = arith.constant 7 : index
    %c0_84 = arith.constant 0 : index
    %c0_85 = arith.constant 0 : index
    %105 = vector.load %arg7[%c7, %c0_84, %c0_85] : memref<9x4x4xf32, #tpu.memory_space<vmem>>, vector<1x4x4xf32>
    %106 = vector.shape_cast %105 : vector<1x4x4xf32> to vector<4x4xf32>
    %cst_86 = arith.constant dense<0.000000e+00> : vector<4x256xf32>
    %107 = tpu.matmul %106, %104, %cst_86 {dimension_numbers = #tpu.dot_dimension_numbers<[1], [0], [0], [1], [0, 0, 1, 1], [], []>, precision = #tpu.contract_precision<fp32>} : vector<4x4xf32>, vector<4x256xf32>, vector<4x256xf32> -> vector<4x256xf32>
    %108 = arith.addf %103, %107 : vector<4x256xf32>
    %c0_87 = arith.constant 0 : index
    %c145_88 = arith.constant 145 : index
    %109 = vector.load %arg11[%c0_87, %c145_88] : memref<4x512xf32, #tpu.memory_space<vmem>>, vector<4x256xf32>
    %110 = vector.broadcast %0 : vector<1x256xf32> to vector<4x256xf32>
    %111 = arith.mulf %109, %110 : vector<4x256xf32>
    %c8 = arith.constant 8 : index
    %c0_89 = arith.constant 0 : index
    %c0_90 = arith.constant 0 : index
    %112 = vector.load %arg7[%c8, %c0_89, %c0_90] : memref<9x4x4xf32, #tpu.memory_space<vmem>>, vector<1x4x4xf32>
    %113 = vector.shape_cast %112 : vector<1x4x4xf32> to vector<4x4xf32>
    %cst_91 = arith.constant dense<0.000000e+00> : vector<4x256xf32>
    %114 = tpu.matmul %113, %111, %cst_91 {dimension_numbers = #tpu.dot_dimension_numbers<[1], [0], [0], [1], [0, 0, 1, 1], [], []>, precision = #tpu.contract_precision<fp32>} : vector<4x4xf32>, vector<4x256xf32>, vector<4x256xf32> -> vector<4x256xf32>
    %115 = arith.addf %108, %114 : vector<4x256xf32>
    %c0_92 = arith.constant 0 : index
    %c0_93 = arith.constant 0 : index
    %116 = vector.load %arg8[%c0_92, %c0_93] : memref<4x1xf32, #tpu.memory_space<vmem>>, vector<4x1xf32>
    %117 = vector.broadcast %116 : vector<4x1xf32> to vector<4x256xf32>
    %118 = arith.addf %115, %117 : vector<4x256xf32>
    %cst_94 = arith.constant 0.000000e+00 : f32
    %119 = vector.broadcast %cst_94 : f32 to vector<4x256xf32>
    %120 = arith.maximumf %118, %119 : vector<4x256xf32>
    %c0_95 = arith.constant 0 : index
    %c4_96 = arith.constant 4 : index
    %c0_97 = arith.constant 0 : index
    %121 = vector.load %arg9[%c0_95, %c4_96, %c0_97] : memref<1x8x256xf32, #tpu.memory_space<vmem>>, vector<1x4x256xf32>
    %122 = vector.shape_cast %121 : vector<1x4x256xf32> to vector<4x256xf32>
    %123 = vector.shape_cast %120 : vector<4x256xf32> to vector<1x4x256xf32>
    tpu.vector_store %arg9[%c0_95, %c4_96, %c0_97], %123 {strides = array<i32>} : memref<1x8x256xf32, #tpu.memory_space<vmem>>, vector<1x4x256xf32>,
    return
  }
  func.func @transform_0(%arg0: i32) -> (i32, i32, i32) {
    %c0_i32 = arith.constant 0 : i32
    %c0_i32_0 = arith.constant 0 : i32
    %c0_i32_1 = arith.constant 0 : i32
    return %arg0, %c0_i32, %c0_i32_0 : i32, i32, i32
  }
  func.func @transform_1(%arg0: i32) -> (i32, i32) {
    %c0_i32 = arith.constant 0 : i32
    %c0_i32_0 = arith.constant 0 : i32
    %c0_i32_1 = arith.constant 0 : i32
    return %c0_i32, %c0_i32_0 : i32, i32
  }
  func.func @transform_2(%arg0: i32) -> (i32, i32) {
    %c0_i32 = arith.constant 0 : i32
    %c0_i32_0 = arith.constant 0 : i32
    %c0_i32_1 = arith.constant 0 : i32
    return %c0_i32, %c0_i32_0 : i32, i32
  }
  func.func @transform_3(%arg0: i32) -> i32 {
    %c0_i32 = arith.constant 0 : i32
    %c0_i32_0 = arith.constant 0 : i32
    return %c0_i32 : i32
  }
  func.func @transform_4(%arg0: i32) -> (i32, i32) {
    %c0_i32 = arith.constant 0 : i32
    %c0_i32_0 = arith.constant 0 : i32
    %c0_i32_1 = arith.constant 0 : i32
    return %c0_i32, %c0_i32_0 : i32, i32
  }
  func.func @transform_5(%arg0: i32) -> (i32, i32) {
    %c0_i32 = arith.constant 0 : i32
    %c0_i32_0 = arith.constant 0 : i32
    %c0_i32_1 = arith.constant 0 : i32
    return %c0_i32, %c0_i32_0 : i32, i32
  }
  func.func @transform_6(%arg0: i32) -> (i32, i32, i32) {
    %c0_i32 = arith.constant 0 : i32
    %c0_i32_0 = arith.constant 0 : i32
    %c0_i32_1 = arith.constant 0 : i32
    %c0_i32_2 = arith.constant 0 : i32
    return %c0_i32, %c0_i32_0, %c0_i32_1 : i32, i32, i32
  }
  func.func @transform_7(%arg0: i32) -> (i32, i32) {
    %c0_i32 = arith.constant 0 : i32
    %c0_i32_0 = arith.constant 0 : i32
    %c0_i32_1 = arith.constant 0 : i32
    return %c0_i32, %c0_i32_0 : i32, i32
  }
  func.func @transform_8(%arg0: i32) -> (i32, i32, i32) {
    %c0_i32 = arith.constant 0 : i32
    %c0_i32_0 = arith.constant 0 : i32
    %c0_i32_1 = arith.constant 0 : i32
    return %arg0, %c0_i32, %c0_i32_0 : i32, i32, i32
  }
}

</mosaic_0001>

<bundles_post_ra>
// kernel: tpu_custom_call.1
= control target key start
LH: loop header
LB: loop body
LE: loop exit
PB: predicated region body
PF: predicated region fallthrough
CT: control target
= control target key end

     0   :  { %s4818_s0 = inlined_call_operand.vmem [shape: f32[2,4,256], index: 0, kind: input, shape index: {}]   ;;  %s4819_s1 = inlined_call_operand.vmem [shape: f32[2,256], index: 1, kind: input, shape index: {}]   ;;  %s4820_s2 = inlined_call_operand.vmem [shape: f32[4,1], index: 2, kind: input, shape index: {}]   ;;  %s4821_s3 = inlined_call_operand.<no memory space> [shape: f32[1], index: 3, kind: input, shape index: {}]   ;;  %s4822_s4 = inlined_call_operand.vmem [shape: f32[4,9], index: 4, kind: input, shape index: {}]   ;;  %s4823_s5 = inlined_call_operand.vmem [shape: f32[4,1], index: 5, kind: input, shape index: {}]   ;;  %s4824_s6 = inlined_call_operand.vmem [shape: f32[9,4,4], index: 6, kind: input, shape index: {}]   ;;  %s4825_s7 = inlined_call_operand.vmem [shape: f32[4,1], index: 7, kind: input, shape index: {}]   ;;  %s4826_s8 = inlined_call_operand.hbm [shape: f32[2,8,256], index: 8, kind: output, shape index: {}]  }
   0x1   :  { %13 = sst [smem:[#allocation4]] %s4821_s3 }
   0x2   :  { %14 = vsyncpa [#allocation6], 0 }
   0x3   :  { %16 = vsyncpa [#allocation6 + $0x1], 0  ;;  %s4216_s29 = smov 0   ;;  %s4218_s30 = smov 0  }
   0x4   :  { %s4220_s9 = smov 0   ;;  %s4222_s10 = smov 0  }
   0x5 LB: > { %s4237_s3 = sadd.s32 4294967295, %s4150_s10   ;;  %s3996_s11 = sadd.s32 4294967294, %s4150_s10   ;;  %s4150_s10 = sphi %s4222_s10, %s4839_s10   ;;  %s4146_s9 = sphi %s4220_s9, %s4838_s9   ;;  %s4142_s30 = sphi %s4218_s30, %s4837_s30   ;;  %s4138_s29 = sphi %s4216_s29, %s4836_s29  }
   0x6   : > { %s4241_s12 = sadd.s32 1, %s4150_s10   ;;  %s202_s13 = sadd.s32 1, %s4146_s9 }
   0x7   : > { %s199_s14 = ssub.s32 %s4150_s10, %s4241_s12  ;;  %p212_p0 = scmp.ne.s32.totalorder %s4146_s9, %s4142_s30 }
   0x8   : > { %p200_p1 = scmp.eq.s32.totalorder %s199_s14, 0  ;;  %p213_p2 = scmp.eq.s32.totalorder %s4237_s3, 1 }
   0x9   : > { %p218_p3 = scmp.ne.s32.totalorder %s4142_s30, %s4138_s29  ;;  %p219_p4 = scmp.eq.s32.totalorder %s3996_s11, 1 }
   0xa   : > { %s4252_s15 = scalar_select %p200_p1, %s4146_s9, %s202_s13  }
   0xb   : > { %p4254_p5 = por %p213_p2, %p212_p0  ;;  %p4258_p6 = por %p219_p4, %p218_p3 }
   0xc   : > { %p3999_p7 = scmp.ge.s32.totalorder %s4150_s10, 1  ;;  %p266_p8 = scmp.lt.s32.totalorder %s4150_s10, 3 }
   0xe   : > { %p267_p9 = pnand %p3999_p7, %p266_p8 }
   0xf   : > { %s4153_s22 = smov (!%p267_p9), 127   ;;  %s4154_s25 = smov (!%p267_p9), 17  }
  0x10   : > { %270 = sbr.rel (%p267_p9) target bundleno = 1262 (0x4ee), region = 52  ;;  %s4155_s26 = smov (!%p267_p9), 113  }
  0x11   : > { %s4156_s27 = smov (!%p267_p9), 1   ;;  %s4157_s28 = smov (!%p267_p9), 15  }
  0x12   : > { %s4158_s11 = smov (!%p267_p9), 111   ;;  %p300_p10 = scmp.lt.s32.totalorder (!%p267_p9), %s4237_s3, 1 }
  0x13   : > { %s357_s21 = sld [smem:[#allocation4]] (!%p267_p9)  ;;  %s4161_s23 = smov (!%p267_p9), 95  }
  0x14   : > { %s4162_s24 = smov (!%p267_p9), 126   ;;  %s4165_s18 = smov (!%p267_p9), 94  }
  0x15   : > { %v325_v0 = vld [vmem:[%s4820_s2] sm:$0xf]  ;;  %v4152_v2 = vmov 0   ;;  %s301_s13 = scalar_select %p300_p10, %s4237_s3, 1  ;;  %v308_v5 = vlaneseq  ;;  %v4159_v6 = vmov 839922192  }
  0x16   : > { %v4270_v1 = vld [vmem:[%s4819_s1 + $0x1] ss:$2 sm:$0x3]  ;;  %4078 = vset.pattern.permute.xlu0 %v4152_v2  ;;  %4079 = vset.pattern.permute.xlu1 %v4152_v2  ;;  %v4277_v3 = vld [vmem:[%s4819_s1] ss:$2 sm:$0x3]  ;;  %v331_v7 = vunpack.c.l.s4 %v4159_v6 }
  0x17   : > { %328 = vperm.xlu0 %4078, %v325_v0   ;;  %431 = vrot.lane.b32.xlu1 %v4270_v1, %s4153_s22  ;;  %s4021_s14 = sshll.u32 %s301_s13, 3  ;;  %v4160_v8 = vmov 0.0   ;;  %vm310_vm0 = vcmp.lt.s32.totalorder %v308_v5, 128  ;;  %vm342_vm1 = vcmask 1043456   ;;  %vm408_vm10 = vcmask 1040384   ;;  %s4163_s13 = smov 112  }
  0x18   : > { %454 = vrot.lane.b32.xlu2 %v4277_v3, %s4154_s25  ;;  %s304_s20 = scalar_lea.vmem %s4818_s0, %s4021_s14  ;;  %314 = vst [vmem:[#allocation3] sm:$0xf] %v4160_v8  ;;  %v332_v9 = vunpack.c.0.s8 %v331_v7  ;;  %vm411_vm11 = vcmp.lt.s32.totalorder %v308_v5, 256  ;;  %vm427_vm12 = vcmask 924672   ;;  %vm434_vm13 = vcmask 1039360   ;;  %s4164_s14 = smov 110  }
  0x19   : > { %v316_v4 = vld [vmem:[%s304_s20] sm:$0xff]  ;;  %315 = vst [vmem:[#allocation3 + $0xc] sm:$0xf] %v4160_v8  ;;  %v358_v29 = vstv %s357_s21  ;;  %vm457_vm14 = vcmask 138240   ;;  %vm4827_vm15 = vcmask 7168   ;;  %s4166_s19 = smov 96  }
  0x1a   : > { %318 = vst [vmem:[#allocation1] ss:$2 sm:$0xff] %v316_v4 }
  0x1b   : > { %312 = vst.msk [vmem:[#allocation2] sm:$0x1] %vm310_vm0, %v4160_v8 }
  0x1c   : > { %313 = vst.msk [vmem:[#allocation2 + $0x3] sm:$0x1] %vm310_vm0, %v4160_v8  ;;  %vm450_vm0 = vcmask 121856  }
  0x1f   : > { %424 = vrot.lane.b32.xlu0 %v4277_v3, %s4155_s26  ;;  %440 = vrot.lane.b32.xlu1 %v4277_v3, %s4156_s27 }
  0x20   : > { %447 = vrot.lane.b32.xlu2 %v4270_v1, %s4157_s28 }
  0x21   : > { %v4295_v12 = vld.sshfl [vmem:[#allocation1] sm:$0xff pattern:$0x75316420]  ;;  %v4297_v13 = vld.sshfl [vmem:[#allocation1 + $0x8] sm:$0xff pattern:$0x75316420] }
  0x27   : > { %416 = vrot.lane.b32.xlu0 %v4270_v1, %s4158_s11 }
  0x89   : > { %v329_v10 = vpop.permute.xlu0 %328 }
  0x8a   : > { %v333_v11 = vperm.slane %v329_v10, %v332_v9 }
  0x8c   : > { %v335_v14 = vmul.f32 %v333_v11, %v316_v4 }
  0x8e   : > { %337 = vst [vmem:[#allocation1] ss:$2 sm:$0xff] %v335_v14 }
  0x91   : > { %v425_v5 = vpop.permute.xlu0 %424 }
  0x92   : > { %v426_v14 = vrot.slane %v425_v5, 7 }
  0x95   : > { %v338_v15 = vld.sshfl [vmem:[#allocation1] sm:$0xff pattern:$0x75316420]  ;;  %v339_v16 = vld.sshfl [vmem:[#allocation1 + $0x8] sm:$0xff pattern:$0x75316420] }
  0x96   : > { %v343_v17 = vsel %vm342_vm1, %v338_v15, 0.0  ;;  %v350_v18 = vsel %vm342_vm1, %v339_v16, 0.0  ;;  %v432_v16 = vpop.permute.xlu1 %431 }
  0x97   : > { %v344_v19 = vrot.slane %v343_v17, 4  ;;  %v351_v20 = vrot.slane %v350_v18, 4 }
  0x99   : > { %v345_v21 = vadd.f32 %v344_v19, %v343_v17  ;;  %v352_v22 = vadd.f32 %v351_v20, %v350_v18  ;;  %v428_v19 = vsel %vm427_vm12, %v426_v14, %v425_v5 }
  0x9b   : > { %v346_v23 = vrot.slane %v345_v21, 2  ;;  %v353_v24 = vrot.slane %v352_v22, 2 }
  0x9d   : > { %v347_v25 = vadd.f32 %v346_v23, %v345_v21  ;;  %v354_v26 = vadd.f32 %v353_v24, %v352_v22  ;;  %v433_v22 = vrot.slane %v432_v16, 7  ;;  %v455_v23 = vpop.permute.xlu2 %454 }
  0x9f   : > { %v348_v27 = vrot.slane %v347_v25, 1  ;;  %v355_v28 = vrot.slane %v354_v26, 1 }
  0xa1   : > { %v356_v30 = vadd.f32 %v355_v28, %v354_v26  ;;  %v349_v31 = vadd.f32 %v348_v27, %v347_v25  ;;  %v435_v26 = vsel %vm434_vm13, %v433_v22, %v432_v16  ;;  %v441_v28 = vpop.permute.xlu1 %440 }
  0xa3   : > { %v359_v32 = vadd.f32 %v358_v29, %v349_v31  ;;  %v360_v33 = vadd.f32 %v358_v29, %v356_v30  ;;  %v456_v30 = vrot.slane %v455_v23, 7  ;;  %v442_v31 = vrot.slane %v441_v28, 7 }
  0xa5   : > { %v4004_v34 = vmul.f32 -1.442695, %v359_v32  ;;  %v4005_v35 = vmul.f32 -1.442695, %v360_v33 }
  0xa7   : > { %4080 = vpow2.f32 %v4004_v34  ;;  %v458_v34 = vsel %vm457_vm14, %v456_v30, %v455_v23 }
  0xa8   : > { %4082 = vpow2.f32 %v4005_v35  ;;  %v444_v35 = vsel %vm4827_vm15, %v442_v31, %v441_v28  ;;  %vm568_vm15 = vcmask 777216  }
  0xad   : > { %v4081_v36 = vpop.eup %4080 }
  0xae   : > { %v4083_v37 = vpop.eup %4082  ;;  %v367_v38 = vadd.f32 1.0, %v4081_v36 }
  0xaf   : > { %v368_v39 = vadd.f32 1.0, %v4083_v37  ;;  %v448_v37 = vpop.permute.xlu2 %447 }
  0xb0   : > { %4084 = vrcp.f32 %v367_v38  ;;  %v380_v45 = vand.u32 2147483648, %v367_v38  ;;  %v378_v48 = vand.u32 2147483647, %v367_v38  ;;  %vm374_vm4 = vweird.f32 %v367_v38 }
  0xb1   : > { %4086 = vrcp.f32 %v368_v39  ;;  %v395_v49 = vand.u32 2147483648, %v368_v39  ;;  %v393_v51 = vand.u32 2147483647, %v368_v39  ;;  %vm389_vm6 = vweird.f32 %v368_v39 }
  0xb2   : > { %v381_v53 = vor.u32 1.1754944e-38, %v380_v45  ;;  %vm379_vm7 = vcmp.eq.f32.partialorder %v378_v48, 8.507059e+37 }
  0xb3   : > { %v396_v56 = vor.u32 1.1754944e-38, %v395_v49  ;;  %vm394_vm9 = vcmp.eq.f32.partialorder %v393_v51, 8.507059e+37 }
  0xb6   : > { %v4085_v40 = vpop.eup %4084 }
  0xb7   : > { %v4087_v41 = vpop.eup %4086  ;;  %v370_v42 = vmul.f32 %v4085_v40, %v367_v38  ;;  %vm375_vm2 = vweird.f32 %v4085_v40 }
  0xb8   : > { %v385_v43 = vmul.f32 %v4087_v41, %v368_v39  ;;  %vm390_vm3 = vweird.f32 %v4087_v41  ;;  %vm376_vm5 = vmor %vm374_vm4, %vm375_vm2  ;;  %vm419_vm2 = vcmask 908288   ;;  %vm594_vm4 = vcmask 1042432  }
  0xb9   : > { %v371_v44 = vsub.f32 1.0, %v370_v42  ;;  %vm391_vm8 = vmor %vm389_vm6, %vm390_vm3  ;;  %vm590_vm3 = vcmask 1041408   ;;  %vm584_vm6 = vcmask 769024  }
  0xba   : > { %v386_v46 = vsub.f32 1.0, %v385_v43 }
  0xbb   : > { %v372_v47 = vmul.f32 %v4085_v40, %v371_v44 }
  0xbc   : > { %v387_v50 = vmul.f32 %v4087_v41, %v386_v46 }
  0xbd   : > { %v373_v52 = vadd.f32 %v4085_v40, %v372_v47 }
  0xbe   : > { %v388_v54 = vadd.f32 %v4087_v41, %v387_v50 }
  0xbf   : > { %v377_v55 = vsel %vm376_vm5, %v4085_v40, %v373_v52  ;;  %v449_v40 = vrot.slane %v448_v37, 7  ;;  %vm493_vm5 = vcmask 1031168  }
  0xc0   : > { %v382_v57 = vsel %vm379_vm7, %v381_v53, %v377_v55  ;;  %v392_v58 = vsel %vm391_vm8, %v4087_v41, %v388_v54  ;;  %vm4828_vm7 = vcmask 916480   ;;  %vm536_vm8 = vcmask 900096  }
  0xc1   : > { %v397_v59 = vsel %vm394_vm9, %v396_v56, %v392_v58  ;;  %v4006_v60 = vadd.f32 -0.5, %v382_v57  ;;  %v451_v43 = vsel %vm450_vm0, %v449_v40, %v448_v37  ;;  %v417_v56 = vpop.permute.xlu0 %416  ;;  %vm601_vm9 = vcmask 1044480  }
  0xc2   : > { %v4007_v61 = vadd.f32 -0.5, %v397_v59  ;;  %v418_v57 = vrot.slane %v417_v56, 7 }
  0xc3   : > { %v401_v62 = vand.u32 2147483647, %v4006_v60 }
  0xc4   : > { %v402_v63 = vand.u32 2147483647, %v4007_v61  ;;  %v420_v59 = vsel %vm419_vm2, %v418_v57, %v417_v56  ;;  %v614_v57 = vld [vmem:[%s4823_s5] sm:$0xf] }
  0xc5   : > { %v403_v2 = vsub.f32 1.0, %v401_v62 }
  0xc6   : > { %v404_v0 = vsub.f32 1.0, %v402_v63 }
  0xc8   : > { %v407_v4 = vrot.slane %v404_v0, 7 }
  0xca   : > { %v409_v6 = vsel %vm408_vm10, %v403_v2, %v407_v4 }
  0xcb   : > { %413 = vst.msk [vmem:[#allocation2 + $0x1] sm:$0x3] %vm411_vm11, %v409_v6  ;;  %vm552_vm11 = vcmask 785408  }
  0xd2   : > { %v4303_v7 = vld [vmem:[#allocation2] sm:$0x7] }
  0xd3   : > { %v471_v8 = vperm.slane %v4303_v7, 2  ;;  %v470_v9 = vperm.slane %v4303_v7, 1  ;;  %v469_v10 = vperm.slane %v4303_v7, 0  ;;  %v4311_v11 = vld [vmem:[#allocation2 + $0x1] sm:$0x7]  ;;  %v430_v21 = vmul.f32 %v428_v19, %v4303_v7 }
  0xd4   : > { %v438_v15 = vld [vmem:[#allocation2 + $0x1] sm:$0x3]  ;;  %v559_v17 = vperm.slane %v4311_v11, 0  ;;  %v560_v27 = vperm.slane %v4311_v11, 1  ;;  %v437_v29 = vmul.f32 %v435_v26, %v4303_v7  ;;  %v460_v38 = vmul.f32 %v458_v34, %v4311_v11 }
  0xd5   : > { %476 = vrot.lane.b32.xlu0 %v471_v8, %s4153_s22  ;;  %474 = vrot.lane.b32.xlu2 %v470_v9, %s4153_s22  ;;  %v517_v18 = vperm.slane %v438_v15, 1  ;;  %v516_v20 = vperm.slane %v438_v15, 0  ;;  %v486_v24 = vperm.slane %v430_v21, 2  ;;  %v485_v25 = vperm.slane %v430_v21, 1 }
  0xd6   : > { %472 = vrot.lane.b32.xlu1 %v469_v10, %s4153_s22  ;;  %v502_v32 = vperm.slane %v437_v29, 2  ;;  %v501_v33 = vperm.slane %v437_v29, 1  ;;  %v484_v36 = vperm.slane %v430_v21, 0  ;;  %v446_v39 = vmul.f32 %v444_v35, %v4311_v11 }
  0xd7   : > { %v575_v42 = vperm.slane %v460_v38, 0  ;;  %v500_v44 = vperm.slane %v437_v29, 0  ;;  %v453_v45 = vmul.f32 %v451_v43, %v4311_v11  ;;  %v576_v46 = vperm.slane %v460_v38, 1 }
  0xd8   : > { %v527_v41 = vperm.slane %v446_v39, 0  ;;  %v528_v48 = vperm.slane %v446_v39, 1  ;;  %v577_v49 = vperm.slane %v460_v38, 2  ;;  %v529_v50 = vperm.slane %v446_v39, 2 }
  0xd9   : > { %v544_v47 = vperm.slane %v453_v45, 1  ;;  %v543_v51 = vperm.slane %v453_v45, 0  ;;  %v561_v52 = vperm.slane %v4311_v11, 2  ;;  %v545_v53 = vperm.slane %v453_v45, 2 }
  0xda   : > { %v422_v60 = vmul.f32 %v420_v59, %v4303_v7 }
  0xdc   : > { %v463_v61 = vperm.slane %v422_v60, 1  ;;  %v462_v0 = vperm.slane %v422_v60, 0  ;;  %v464_v15 = vperm.slane %v422_v60, 2 }
  0xdd   : > { %562 = vrot.lane.b32.xlu0 %v559_v17, %s4161_s23  ;;  %520 = vrot.lane.b32.xlu2 %v517_v18, %s4158_s11 }
  0xde   : > { %518 = vrot.lane.b32.xlu1 %v516_v20, %s4158_s11 }
  0xe5   : > { %491 = vrot.lane.b32.xlu0 %v486_v24, %s4162_s24  ;;  %489 = vrot.lane.b32.xlu2 %v485_v25, %s4162_s24 }
  0xe6   : > { %564 = vrot.lane.b32.xlu1 %v560_v27, %s4161_s23 }
  0xed   : > { %507 = vrot.lane.b32.xlu0 %v502_v32, %s4163_s13  ;;  %505 = vrot.lane.b32.xlu2 %v501_v33, %s4163_s13 }
  0xee   : > { %487 = vrot.lane.b32.xlu1 %v484_v36, %s4162_s24 }
  0xf5   : > { %530 = vrot.lane.b32.xlu0 %v527_v41, %s4164_s14  ;;  %578 = vrot.lane.b32.xlu2 %v575_v42, %s4165_s18 }
  0xf6   : > { %503 = vrot.lane.b32.xlu1 %v500_v44, %s4163_s13 }
  0xfd   : > { %580 = vrot.lane.b32.xlu0 %v576_v46, %s4165_s18  ;;  %548 = vrot.lane.b32.xlu2 %v544_v47, %s4166_s19 }
  0xfe   : > { %532 = vrot.lane.b32.xlu1 %v528_v48, %s4164_s14 }
 0x105   : > { %582 = vrot.lane.b32.xlu0 %v577_v49, %s4165_s18  ;;  %534 = vrot.lane.b32.xlu2 %v529_v50, %s4164_s14  ;;  %s4167_s14 = smov 16  }
 0x106   : > { %546 = vrot.lane.b32.xlu1 %v543_v51, %s4166_s19 }
 0x10d   : > { %566 = vrot.lane.b32.xlu2 %v561_v52, %s4161_s23  ;;  %s4108_s23 = scalar_lea.hbm %s4826_s8, 32 }
 0x10e   : > { %550 = vrot.lane.b32.xlu1 %v545_v53, %s4166_s19 }
 0x12f   : > { %v475_v54 = vpop.permute.xlu2 %474 }
 0x137   : > { %v521_v55 = vpop.permute.xlu2 %520 }
 0x13f   : > { %v490_v58 = vpop.permute.xlu2 %489 }
 0x147   : > { %v477_v62 = vpop.permute.xlu0 %476  ;;  %v506_v63 = vpop.permute.xlu2 %505 }
 0x148   : > { %v479_v2 = vsel %vm434_vm13, %v475_v54, %v477_v62  ;;  %v473_v4 = vpop.permute.xlu1 %472  ;;  %v589_v16 = vsel %vm408_vm10, %v464_v15, %v477_v62 }
 0x149   : > { %v588_v6 = vsel %vm408_vm10, %v463_v61, %v479_v2  ;;  %v478_v8 = vsel %vm434_vm13, %v473_v4, %v475_v54  ;;  %v613_v61 = vld [vmem:[%s4822_s4] sm:$0xf] }
 0x14a   : > { %v587_v9 = vsel %vm408_vm10, %v462_v0, %v478_v8 }
 0x14f   : > { %v563_v10 = vpop.permute.xlu0 %562  ;;  %v579_v5 = vpop.permute.xlu2 %578 }
 0x150   : > { %v519_v11 = vpop.permute.xlu1 %518  ;;  %629 = vrot.lane.b32.xlu0 %v579_v5, %s4154_s25 }
 0x151   : > { %v522_v39 = vsel %vm419_vm2, %v519_v11, %v521_v55 }
 0x157   : > { %v492_v14 = vpop.permute.xlu0 %491  ;;  %v549_v24 = vpop.permute.xlu2 %548 }
 0x158   : > { %v565_v7 = vpop.permute.xlu1 %564  ;;  %v593_v17 = vsel %vm590_vm3, %v589_v16, %v492_v14  ;;  %v495_v30 = vsel %vm493_vm5, %v490_v58, %v492_v14  ;;  %v977_v16 = vperm.slane %v4270_v1, 0 }
 0x159   : > { %v592_v34 = vsel %vm590_vm3, %v588_v6, %v495_v30  ;;  %v569_v48 = vsel %vm568_vm15, %v563_v10, %v565_v7 }
 0x15f   : > { %v508_v18 = vpop.permute.xlu0 %507  ;;  %v535_v36 = vpop.permute.xlu2 %534 }
 0x160   : > { %v597_v19 = vsel %vm594_vm4, %v593_v17, %v508_v18  ;;  %v488_v20 = vpop.permute.xlu1 %487  ;;  %v511_v32 = vsel %vm4828_vm7, %v506_v63, %v508_v18  ;;  %v978_v17 = vperm.slane %v4270_v1, 1  ;;  %v1626_v18 = vperm.slane %v4277_v3, 0 }
 0x161   : > { %v600_v21 = vsel %vm342_vm1, %v597_v19, %v521_v55  ;;  %v494_v25 = vsel %vm493_vm5, %v488_v20, %v490_v58  ;;  %v596_v35 = vsel %vm594_vm4, %v592_v34, %v511_v32  ;;  %vm605_vm5 = vcmask 1045504  }
 0x162   : > { %v591_v31 = vsel %vm590_vm3, %v587_v9, %v494_v25  ;;  %v599_v41 = vsel %vm342_vm1, %v596_v35, %v522_v39  ;;  %vm641_vm3 = vcmask 72704   ;;  %v1627_v19 = vperm.slane %v4277_v3, 1 }
 0x163   : > { %v643_v62 = vsel %vm641_vm3, %v613_v61, 0 }
 0x167   : > { %v531_v22 = vpop.permute.xlu0 %530  ;;  %v567_v53 = vpop.permute.xlu2 %566 }
 0x168   : > { %v504_v23 = vpop.permute.xlu1 %503  ;;  %v570_v58 = vsel %vm568_vm15, %v565_v7, %v567_v53  ;;  %vm1006_vm15 = vcmask 130048  }
 0x169   : > { %v510_v26 = vsel %vm4828_vm7, %v504_v23, %v506_v63  ;;  %vm609_vm7 = vcmask 1046528   ;;  %v4382_v63 = vand.u32 4294901760, %v643_v62  ;;  %v979_v23 = vrot.slane %v978_v17, 4 }
 0x16a   : > { %v595_v33 = vsel %vm594_vm4, %v591_v31, %v510_v26  ;;  %vm4831_vm4 = vcmask 7168  }
 0x16b   : > { %v598_v37 = vsel %vm342_vm1, %v595_v33, %v519_v11  ;;  %v4385_v0 = vsub.f32 %v643_v62, %v4382_v63  ;;  %v4403_v31 = vsel %vm342_vm1, %v977_v16, %v979_v23 }
 0x16c   : > { %v602_v43 = vsel %vm601_vm9, %v598_v37, %v531_v22 }
 0x16f   : > { %v581_v27 = vpop.permute.xlu0 %580 }
 0x170   : > { %v533_v28 = vpop.permute.xlu1 %532  ;;  %v585_v29 = vsel %vm584_vm6, %v579_v5, %v581_v27  ;;  %v4390_v5 = vand.u32 4294901760, %v4385_v0 }
 0x171   : > { %631 = vrot.lane.b32.xlu1 %v585_v29, %s4154_s25  ;;  %v537_v38 = vsel %vm536_vm8, %v531_v22, %v533_v28  ;;  %v538_v52 = vsel %vm536_vm8, %v533_v28, %v535_v36 }
 0x172   : > { %v603_v45 = vsel %vm601_vm9, %v599_v41, %v537_v38  ;;  %v604_v55 = vsel %vm601_vm9, %v600_v21, %v538_v52  ;;  %v670_v7 = vsub.f32 %v4385_v0, %v4390_v5 }
 0x174   : > { %v671_v29 = vand.u32 4294901760, %v670_v7 }
 0x177   : > { %v583_v40 = vpop.permute.xlu0 %582 }
 0x178   : > { %v547_v42 = vpop.permute.xlu1 %546  ;;  %v586_v44 = vsel %vm584_vm6, %v581_v27, %v583_v40 }
 0x179   : > { %v553_v46 = vsel %vm552_vm11, %v547_v42, %v549_v24  ;;  %v606_v47 = vsel %vm605_vm5, %v602_v43, %v547_v42  ;;  %633 = vrot.lane.b32.xlu1 %v586_v44, %s4154_s25 }
 0x17a   : > { %v610_v49 = vsel %vm609_vm7, %v606_v47, %v563_v10  ;;  %v607_v50 = vsel %vm605_vm5, %v603_v45, %v553_v46 }
 0x17b   : > { %623 = vrot.lane.b32.xlu2 %v610_v49, %s4154_s25  ;;  %v611_v51 = vsel %vm609_vm7, %v607_v50, %v569_v48 }
 0x17c   : > { %625 = vrot.lane.b32.xlu0 %v611_v51, %s4154_s25 }
 0x180   : > { %v551_v54 = vpop.permute.xlu1 %550 }
 0x181   : > { %v554_v56 = vsel %vm552_vm11, %v549_v24, %v551_v54  ;;  %v1628_v24 = vrot.slane %v1627_v19, 4  ;;  %981 = vrot.lane.b32.xlu1 %v4403_v31, %s4158_s11 }
 0x182   : > { %v608_v59 = vsel %vm605_vm5, %v604_v55, %v554_v56 }
 0x183   : > { %v612_v60 = vsel %vm609_vm7, %v608_v59, %v570_v58  ;;  %v4406_v3 = vsel %vm342_vm1, %v1626_v18, %v1628_v24 }
 0x184   : > { %617 = vperm.xlu0 %4078, %v614_v57   ;;  %627 = vrot.lane.b32.xlu2 %v612_v60, %s4154_s25 }
 0x18c   : > { %1630 = vrot.lane.b32.xlu2 %v4406_v3, %s4155_s26 }
 0x1c2   : > { %v630_v2 = vpop.permute.xlu0 %629 }
 0x1d5   : > { %v624_v6 = vpop.permute.xlu2 %623 }
 0x1de   : > { %v628_v25 = vpop.permute.xlu2 %627 }
 0x1e3   : > { %v632_v4 = vpop.permute.xlu1 %631 }
 0x1e4   : > { %v637_v8 = vsel %vm457_vm14, %v630_v2, %v632_v4 }
 0x1e5   : > { %v645_v9 = vsel %vm408_vm10, %v637_v8, 0 }
 0x1e6   : > { %v663_v10 = vand.u32 4294901760, %v645_v9 }
 0x1e8   : > { %v691_v11 = vsub.f32 %v645_v9, %v663_v10  ;;  %664 = vmatpush.msra.mxu0 %v663_v10  ;;  %748 = vmatpush.msra.mxu3 %v663_v10 }
 0x1ea   : > { %723 = vmatpush.msra.mxu2 %v691_v11  ;;  %v692_v14 = vand.u32 4294901760, %v691_v11 }
 0x1eb   : > { %v634_v15 = vpop.permute.xlu1 %633 }
 0x1ec   : > { %v638_v20 = vsel %vm457_vm14, %v632_v4, %v634_v15  ;;  %v693_v21 = vsub.f32 %v691_v11, %v692_v14 }
 0x1ed   : > { %v647_v22 = vsel %vm408_vm10, %v638_v20, 0  ;;  %v1631_v20 = vpop.permute.xlu2 %1630  ;;  %vm1009_vm10 = vcmask 31744  }
 0x1ee   : > { %v822_v26 = vand.u32 4294901760, %v647_v22  ;;  %v626_v27 = vpop.permute.xlu0 %625  ;;  %v694_v28 = vand.u32 4294901760, %v693_v21 }
 0x1ef   : > { %v635_v30 = vsel %vm457_vm14, %v624_v6, %v626_v27  ;;  %v636_v1 = vsel %vm457_vm14, %v626_v27, %v628_v25 }
 0x1f0   : > { %v850_v32 = vsub.f32 %v647_v22, %v822_v26  ;;  %v665_v33 = vand.u32 4294901760, %v635_v30  ;;  %v824_v34 = vand.u32 4294901760, %v636_v1  ;;  %695 = vmatpush.msra.mxu1 %v694_v28  ;;  %v1632_v22 = vrot.slane %v1631_v20, 4 }
 0x1f2   : > { %v697_v35 = vsub.f32 %v635_v30, %v665_v33  ;;  %v856_v36 = vsub.f32 %v636_v1, %v824_v34  ;;  %666 = vmatpush.msra.mxu0 %v665_v33  ;;  %750 = vmatpush.msra.mxu3 %v665_v33  ;;  %v851_v37 = vand.u32 4294901760, %v850_v32  ;;  %v1633_v27 = vsel %vm427_vm12, %v1632_v22, %v1631_v20 }
 0x1f3   : > { %672 = vmatmul.f32.vlgmr.msra.gmra.mxu0 %v671_v29  ;;  %754 = vmatmul.f32.vlgmr.msra.gmra.mxu3 %v4390_v5  ;;  %v982_v15 = vpop.permute.xlu1 %981 }
 0x1f4   : > { %775 = vmatpush.msrb.mxu0 %v692_v14  ;;  %726 = vmatpush.msra.mxu2 %v697_v35  ;;  %v698_v38 = vand.u32 4294901760, %v697_v35  ;;  %v852_v39 = vsub.f32 %v850_v32, %v851_v37  ;;  %v857_v40 = vand.u32 4294901760, %v856_v36  ;;  %v983_v18 = vrot.slane %v982_v15, 4 }
 0x1f5   : > { %729 = vmatmul.f32.vlgmr.msra.gmra.mxu2 %v4385_v0 }
 0x1f6   : > { %823 = vmatpush.msrb.mxu2 %v822_v26  ;;  %779 = vmatpush.msrb.mxu0 %v698_v38  ;;  %v853_v41 = vand.u32 4294901760, %v852_v39  ;;  %v699_v42 = vsub.f32 %v697_v35, %v698_v38  ;;  %v858_v43 = vsub.f32 %v856_v36, %v857_v40  ;;  %v618_v50 = vpop.permute.xlu0 %617  ;;  %v984_v19 = vsel %vm419_vm2, %v983_v18, %v982_v15 }
 0x1f8   : > { %882 = vmatpush.msra.mxu0 %v850_v32  ;;  %825 = vmatpush.msrb.mxu2 %v824_v34  ;;  %v700_v44 = vand.u32 4294901760, %v699_v42  ;;  %v859_v45 = vand.u32 4294901760, %v858_v43 }
 0x1f9   : > { %854 = vmatpush.msrb.mxu3 %v853_v41 }
 0x1fa   : > { %934 = vmatpush.msra.mxu2 %v851_v37  ;;  %885 = vmatpush.msra.mxu0 %v856_v36  ;;  %v4008_v37 = vld [vmem:[%s4824_s6 + $0x4] sm:$0xf] }
 0x1fb   : > { %701 = vmatpush.msra.mxu1 %v700_v44  ;;  %860 = vmatpush.msrb.mxu3 %v859_v45  ;;  %v1011_v38 = vsel %vm1009_vm10, %v4008_v37, 0 }
 0x1fc   : > { %938 = vmatpush.msra.mxu2 %v857_v40  ;;  %703 = vmatmul.f32.vlgmr.msra.gmra.mxu1 %v4382_v63  ;;  %v4447_v39 = vand.u32 4294901760, %v1011_v38 }
 0x1fd   : > { %800 = vmatpush.msrb.mxu1 %v663_v10  ;;  %959 = vmatpush.msra.mxu3 %v822_v26 }
 0x1fe   : > { %831 = vmatmul.f32.vlgmr.msrb.gmra.mxu2 %v671_v29  ;;  %781 = vmatmul.f32.vlgmr.msrb.gmra.mxu0 %v4382_v63  ;;  %v4450_v40 = vsub.f32 %v1011_v38, %v4447_v39 }
 0x1ff   : > { %802 = vmatpush.msrb.mxu1 %v665_v33  ;;  %961 = vmatpush.msra.mxu3 %v824_v34 }
 0x200   : > { %862 = vmatmul.f32.vlgmr.msrb.gmra.mxu3 %v4382_v63  ;;  %v4453_v41 = vand.u32 4294901760, %v4450_v40 }
 0x201   : > { %907 = vmatpush.msra.mxu1 %v822_v26 }
 0x202   : > { %v1037_v43 = vsub.f32 %v4450_v40, %v4453_v41 }
 0x203   : > { %909 = vmatpush.msra.mxu1 %v824_v34 }
 0x204   : > { %804 = vmatmul.f32.vlgmr.msrb.gmra.mxu1 %v4382_v63 }
 0x206   : > { %888 = vmatmul.f32.vlgmr.msra.gmra.mxu0 %v4385_v0  ;;  %940 = vmatmul.f32.vlgmr.msra.gmra.mxu2 %v4382_v63 }
 0x208   : > { %963 = vmatmul.f32.vlgmr.msra.gmra.mxu3 %v4382_v63 }
 0x20c   : > { %913 = vmatmul.f32.vlgmr.msra.gmra.mxu1 %v4390_v5 }
 0x270   : > { %v673_v46 = vpop.f32.mrf.mxu0 }
 0x271   : > { %v674_v52 = vadd.f32 %v673_v46, %v618_v50 }
 0x276   : > { %v755_v47 = vpop.f32.mrf.mxu3 }
 0x278   : > { %v730_v49 = vpop.f32.mrf.mxu2 }
 0x279   : > { %v704_v48 = vpop.f32.mrf.mxu1 }
 0x27a   : > { %v705_v53 = vadd.f32 %v704_v48, %v674_v52 }
 0x27b   : > { %v782_v51 = vpop.f32.mrf.mxu0 }
 0x27c   : > { %v731_v56 = vadd.f32 %v730_v49, %v705_v53  ;;  %v989_v53 = vld [vmem:[%s4824_s6] sm:$0xf] }
 0x27e   : > { %v756_v61 = vadd.f32 %v755_v47, %v731_v56 }
 0x280   : > { %v783_v2 = vadd.f32 %v782_v51, %v756_v61 }
 0x281   : > { %v805_v54 = vpop.f32.mrf.mxu1  ;;  %v832_v55 = vpop.f32.mrf.mxu2 }
 0x282   : > { %v833_v57 = vadd.f32 %v832_v55, %v618_v50  ;;  %v806_v9 = vadd.f32 %v805_v54, %v783_v2  ;;  %v1038_v50 = vand.u32 4294901760, %v1037_v43 }
 0x283   : > { %v863_v58 = vpop.f32.mrf.mxu3  ;;  %v889_v60 = vpop.f32.mrf.mxu0 }
 0x284   : > { %v864_v59 = vadd.f32 %v863_v58, %v833_v57  ;;  %v967_v11 = vmax.f32 %v806_v9, 0.0 }
 0x286   : > { %v890_v62 = vadd.f32 %v889_v60, %v864_v59  ;;  %v1326_v59 = vsel %vm1009_vm10, %v989_v53, 0 }
 0x289   : > { %v914_v63 = vpop.f32.mrf.mxu1  ;;  %v941_v0 = vpop.f32.mrf.mxu2 }
 0x28a   : > { %v915_v4 = vadd.f32 %v914_v63, %v890_v62 }
 0x28b   : > { %v964_v6 = vpop.f32.mrf.mxu3 }
 0x28c   : > { %v942_v8 = vadd.f32 %v941_v0, %v915_v4 }
 0x28e   : > { %v965_v10 = vadd.f32 %v964_v6, %v942_v8  ;;  %v4467_v8 = vand.u32 4294901760, %v1326_v59 }
 0x290   : > { %v968_v5 = vmax.f32 %v965_v10, 0.0 }
 0x292   : > { %v971_v14 = vrot.slane %v968_v5, 4 }
 0x294   : > { %v4423_v7 = vsel %vm342_vm1, %v967_v11, %v971_v14 }
 0x295   : > { %974 = vst [vmem:[#allocation3 + $0x4] sm:$0xff] %v4423_v7 }
 0x29c   : > { %v4426_v16 = vld [vmem:[#allocation3] sm:$0xff]  ;;  %v976_v17 = vld [vmem:[#allocation3 + $0x8] sm:$0xf] }
 0x29d   : > { %994 = vst [vmem:[#allocation1] ss:$2 sm:$0xff] %v4426_v16  ;;  %v987_v21 = vmul.f32 %v984_v19, %v4426_v16  ;;  %v988_v23 = vmul.f32 %v983_v18, %v976_v17  ;;  %v1625_v28 = vld [vmem:[#allocation3 + $0x8] sm:$0xf]  ;;  %v1636_v29 = vmul.f32 %v1633_v27, %v4426_v16  ;;  %v4477_v19 = vsub.f32 %v1326_v59, %v4467_v8 }
 0x29e   : > { %996 = vst [vmem:[#allocation1 + $0x10] ss:$2 sm:$0xff] %v976_v17  ;;  %v1637_v30 = vmul.f32 %v1632_v22, %v1625_v28  ;;  %v1958_v4 = vld [vmem:[#allocation3 + $0x8] sm:$0xf] }
 0x2a4   : > { %v998_v24 = vld.sshfl [vmem:[#allocation1 + $0x8] sm:$0xff pattern:$0x75316420]  ;;  %v997_v25 = vld.sshfl [vmem:[#allocation1] sm:$0xff pattern:$0x75316420] }
 0x2a5   : > { %v999_v26 = vld.sshfl [vmem:[#allocation1 + $0x10] sm:$0xff pattern:$0x75316420]  ;;  %1002 = vrot.lane.b32.xlu1 %v998_v24, %s4167_s14  ;;  %1000 = vrot.lane.b32.xlu0 %v997_v25, %s4167_s14  ;;  %1311 = vst [vmem:[#allocation1] ss:$2 sm:$0xff] %v987_v21  ;;  %v4487_v25 = vand.u32 4294901760, %v4477_v19 }
 0x2a6   : > { %1313 = vst [vmem:[#allocation1 + $0x10] ss:$2 sm:$0xff] %v988_v23  ;;  %1004 = vrot.lane.b32.xlu2 %v999_v26, %s4167_s14 }
 0x2ac   : > { %v1315_v1 = vld.sshfl [vmem:[#allocation1 + $0x8] sm:$0xff pattern:$0x75316420]  ;;  %v1314_v32 = vld.sshfl [vmem:[#allocation1] sm:$0xff pattern:$0x75316420] }
 0x2ad   : > { %v1316_v33 = vld.sshfl [vmem:[#allocation1 + $0x10] sm:$0xff pattern:$0x75316420]  ;;  %1959 = vrot.lane.b32.xlu0 %v4403_v31, %s4153_s22  ;;  %1317 = vrot.lane.b32.xlu1 %v1314_v32, %s4154_s25  ;;  %1642 = vst [vmem:[#allocation1] ss:$2 sm:$0xff] %v1636_v29 }
 0x2ae   : > { %1644 = vst [vmem:[#allocation1 + $0x10] ss:$2 sm:$0xff] %v1637_v30  ;;  %1319 = vrot.lane.b32.xlu2 %v1315_v1, %s4154_s25 }
 0x2b4   : > { %v1646_v34 = vld.sshfl [vmem:[#allocation1 + $0x8] sm:$0xff pattern:$0x75316420]  ;;  %v1645_v35 = vld.sshfl [vmem:[#allocation1] sm:$0xff pattern:$0x75316420] }
 0x2b5   : > { %1321 = vrot.lane.b32.xlu0 %v1316_v33, %s4154_s25  ;;  %1648 = vrot.lane.b32.xlu1 %v1645_v35, %s4157_s28  ;;  %v1647_v36 = vld.sshfl [vmem:[#allocation1 + $0x10] sm:$0xff pattern:$0x75316420] }
 0x2b6   : > { %1650 = vrot.lane.b32.xlu2 %v1646_v34, %s4157_s28  ;;  %v1352_v34 = vsub.f32 %v4477_v19, %v4487_v25 }
 0x2bd   : > { %1652 = vrot.lane.b32.xlu0 %v1647_v36, %s4157_s28  ;;  %2596 = vrot.lane.b32.xlu1 %v4406_v3, %s4156_s27  ;;  %v2595_v36 = vld [vmem:[#allocation3 + $0xc] sm:$0xf] }
 0x300   : > { %v1005_v42 = vpop.permute.xlu2 %1004 }
 0x308   : > { %v1320_v56 = vpop.permute.xlu2 %1319 }
 0x310   : > { %v1651_v28 = vpop.permute.xlu2 %1650 }
 0x317   : > { %v1003_v44 = vpop.permute.xlu1 %1002  ;;  %v1001_v45 = vpop.permute.xlu0 %1000 }
 0x318   : > { %v1008_v46 = vsel %vm1006_vm15, %v1003_v44, %v1005_v42  ;;  %v1007_v47 = vsel %vm1006_vm15, %v1001_v45, %v1003_v44 }
 0x319   : > { %v1015_v48 = vsel %vm342_vm1, %v1008_v46, 0  ;;  %v1013_v49 = vsel %vm342_vm1, %v1007_v47, 0  ;;  %v1353_v47 = vand.u32 4294901760, %v1352_v34 }
 0x31a   : > { %v1178_v51 = vand.u32 4294901760, %v1015_v48  ;;  %v1032_v52 = vand.u32 4294901760, %v1013_v49 }
 0x31c   : > { %v1205_v54 = vsub.f32 %v1015_v48, %v1178_v51  ;;  %v1059_v55 = vsub.f32 %v1013_v49, %v1032_v52  ;;  %1033 = vmatpush.msrb.mxu0 %v1032_v52  ;;  %1109 = vmatpush.msrb.mxu3 %v1032_v52 }
 0x31d   : > { %1039 = vmatmul.f32.vlgmr.msrb.gmra.mxu0 %v1038_v50  ;;  %1113 = vmatmul.f32.vlgmr.msrb.gmra.mxu3 %v4453_v41 }
 0x31e   : > { %1086 = vmatpush.msrb.mxu2 %v1059_v55  ;;  %v1060_v57 = vand.u32 4294901760, %v1059_v55  ;;  %v1206_v58 = vand.u32 4294901760, %v1205_v54 }
 0x31f   : > { %1089 = vmatmul.f32.vlgmr.msrb.gmra.mxu2 %v4450_v40  ;;  %v1960_v60 = vpop.permute.xlu0 %1959  ;;  %v1318_v61 = vpop.permute.xlu1 %1317 }
 0x320   : > { %v1961_v62 = vrot.slane %v1960_v60, 4  ;;  %v1323_v63 = vsel %vm457_vm14, %v1318_v61, %v1320_v56  ;;  %1179 = vmatpush.msra.mxu2 %v1178_v51  ;;  %1135 = vmatpush.msra.mxu0 %v1060_v57  ;;  %v1061_v0 = vsub.f32 %v1059_v55, %v1060_v57  ;;  %v1207_v2 = vsub.f32 %v1205_v54, %v1206_v58 }
 0x321   : > { %v1328_v6 = vsel %vm342_vm1, %v1323_v63, 0 }
 0x322   : > { %1281 = vmatpush.msrb.mxu2 %v1206_v58  ;;  %1232 = vmatpush.msrb.mxu0 %v1205_v54  ;;  %v1962_v9 = vsel %vm434_vm13, %v1961_v62, %v1960_v60  ;;  %v1966_v10 = vmul.f32 %v1961_v62, %v1958_v4  ;;  %v4470_v5 = vand.u32 4294901760, %v1328_v6  ;;  %v1062_v11 = vand.u32 4294901760, %v1061_v0 }
 0x323   : > { %v1965_v14 = vmul.f32 %v1962_v9, %v4426_v16  ;;  %v1208_v15 = vand.u32 4294901760, %v1207_v2 }
 0x324   : > { %1973 = vst [vmem:[#allocation1 + $0x10] ss:$2 sm:$0xff] %v1966_v10  ;;  %v1374_v17 = vsub.f32 %v1328_v6, %v4470_v5  ;;  %1063 = vmatpush.msrb.mxu1 %v1062_v11 }
 0x325   : > { %1971 = vst [vmem:[#allocation1] ss:$2 sm:$0xff] %v1965_v14  ;;  %1209 = vmatpush.msra.mxu3 %v1208_v15  ;;  %1065 = vmatmul.f32.vlgmr.msrb.gmra.mxu1 %v4447_v39 }
 0x326   : > { %v1375_v18 = vand.u32 4294901760, %v1374_v17  ;;  %1137 = vmatmul.f32.vlgmr.msra.gmra.mxu0 %v4447_v39  ;;  %1157 = vmatpush.msra.mxu1 %v1032_v52 }
 0x327   : > { %1211 = vmatmul.f32.vlgmr.msra.gmra.mxu3 %v4447_v39  ;;  %1348 = vmatpush.msra.mxu0 %v4470_v5  ;;  %v1322_v16 = vpop.permute.xlu0 %1321  ;;  %v1649_v20 = vpop.permute.xlu1 %1648 }
 0x328   : > { %1303 = vmatpush.msrb.mxu3 %v1178_v51  ;;  %1255 = vmatpush.msrb.mxu1 %v1178_v51  ;;  %v1324_v21 = vsel %vm457_vm14, %v1320_v56, %v1322_v16  ;;  %v1376_v22 = vsub.f32 %v1374_v17, %v1375_v18  ;;  %v1654_v32 = vsel %vm450_vm0, %v1649_v20, %v1651_v28 }
 0x329   : > { %v1330_v23 = vsel %vm342_vm1, %v1324_v21, 0  ;;  %1185 = vmatmul.f32.vlgmr.msra.gmra.mxu2 %v1038_v50  ;;  %v1659_v38 = vsel %vm342_vm1, %v1654_v32, 0  ;;  %v3253_v21 = vld [vmem:[#allocation3 + $0xc] sm:$0xf] }
 0x32a   : > { %1424 = vmatpush.msra.mxu3 %v4470_v5  ;;  %v4484_v24 = vand.u32 4294901760, %v1330_v23  ;;  %1401 = vmatpush.msra.mxu2 %v1374_v17  ;;  %v1377_v27 = vand.u32 4294901760, %v1376_v22  ;;  %v1678_v48 = vand.u32 4294901760, %v1659_v38 }
 0x32b   : > { %v1976_v26 = vld.sshfl [vmem:[#allocation1 + $0x10] sm:$0xff pattern:$0x75316420] }
 0x32c   : > { %v1520_v29 = vsub.f32 %v1330_v23, %v4484_v24  ;;  %1981 = vrot.lane.b32.xlu1 %v1976_v26, %s4156_s27  ;;  %v1975_v30 = vld.sshfl [vmem:[#allocation1 + $0x8] sm:$0xff pattern:$0x75316420]  ;;  %v1974_v1 = vld.sshfl [vmem:[#allocation1] sm:$0xff pattern:$0x75316420]  ;;  %v1705_v54 = vsub.f32 %v1659_v38, %v1678_v48 }
 0x32d   : > { %1159 = vmatmul.f32.vlgmr.msra.gmra.mxu1 %v4447_v39  ;;  %1979 = vrot.lane.b32.xlu0 %v1975_v30, %s4156_s27  ;;  %2290 = vst [vmem:[#allocation1] ss:$2 sm:$0xff] %v4423_v7 }
 0x32e   : > { %v1521_v33 = vand.u32 4294901760, %v1520_v29  ;;  %1977 = vrot.lane.b32.xlu2 %v1974_v1, %s4156_s27  ;;  %1235 = vmatmul.f32.vlgmr.msrb.gmra.mxu0 %v4450_v40  ;;  %v1706_v57 = vand.u32 4294901760, %v1705_v54 }
 0x32f   : > { %1305 = vmatmul.f32.vlgmr.msrb.gmra.mxu3 %v4447_v39  ;;  %1378 = vmatpush.msra.mxu1 %v1377_v27  ;;  %v1653_v35 = vpop.permute.xlu0 %1652  ;;  %v2597_v37 = vpop.permute.xlu1 %2596 }
 0x330   : > { %1450 = vmatpush.msrb.mxu0 %v1375_v18  ;;  %v1655_v42 = vsel %vm450_vm0, %v1651_v28, %v1653_v35  ;;  %v2598_v43 = vrot.slane %v2597_v37, 4  ;;  %v1522_v44 = vsub.f32 %v1520_v29, %v1521_v33  ;;  %v1707_v62 = vsub.f32 %v1705_v54, %v1706_v57 }
 0x331   : > { %1283 = vmatmul.f32.vlgmr.msrb.gmra.mxu2 %v4447_v39  ;;  %v1661_v49 = vsel %vm342_vm1, %v1655_v42, 0  ;;  %v4009_v39 = vld [vmem:[%s4824_s6 + $0x8] sm:$0xf] }
 0x332   : > { %v2599_v40 = vsel %vm4831_vm4, %v2598_v43, %v2597_v37  ;;  %v2603_v45 = vmul.f32 %v2598_v43, %v2595_v36  ;;  %1494 = vmatpush.msrb.mxu2 %v4484_v24  ;;  %v1523_v46 = vand.u32 4294901760, %v1522_v44  ;;  %v1824_v53 = vand.u32 4294901760, %v1661_v49  ;;  %v4011_v43 = vld [vmem:[%s4824_s6 + $0x10] sm:$0xf] }
 0x333   : > { %v2602_v50 = vmul.f32 %v2599_v40, %v4423_v7  ;;  %v1708_v2 = vand.u32 4294901760, %v1707_v62 }
 0x334   : > { %v4507_v51 = vld.sshfl [vmem:[#allocation1] sm:$0xff pattern:$0x75316420]  ;;  %v4509_v52 = vld.sshfl [vmem:[#allocation1 + $0x8] sm:$0xff pattern:$0x75316420]  ;;  %1524 = vmatpush.msrb.mxu3 %v1523_v46  ;;  %v1851_v55 = vsub.f32 %v1661_v49, %v1824_v53 }
 0x335   : > { %2610 = vst [vmem:[#allocation1 + $0x10] ss:$2 sm:$0xff] %v2603_v45  ;;  %1259 = vmatmul.f32.vlgmr.msrb.gmra.mxu1 %v4453_v41  ;;  %v1657_v41 = vsel %vm1009_vm10, %v4009_v39, 0  ;;  %v2296_v35 = vsel %vm342_vm1, %v4507_v51, 0  ;;  %v2298_v36 = vsel %vm342_vm1, %v4509_v52, 0  ;;  %v2294_v49 = vsel %vm1009_vm10, %v4011_v43, 0 }
 0x336   : > { %2608 = vst [vmem:[#allocation1] ss:$2 sm:$0xff] %v2602_v50  ;;  %2925 = vrot.lane.b32.xlu2 %v4403_v31, %s4157_s28  ;;  %1354 = vmatmul.f32.vlgmr.msra.gmra.mxu0 %v1353_v47  ;;  %v1680_v56 = vand.u32 4294901760, %v1657_v41  ;;  %v1852_v31 = vand.u32 4294901760, %v1851_v55  ;;  %v4568_v44 = vand.u32 4294901760, %v2296_v35  ;;  %v4570_v40 = vand.u32 4294901760, %v2298_v36 }
 0x337   : > { %1428 = vmatmul.f32.vlgmr.msra.gmra.mxu3 %v4487_v25  ;;  %1472 = vmatpush.msrb.mxu1 %v4470_v5  ;;  %v2924_v5 = vld [vmem:[#allocation3 + $0xc] sm:$0xf]  ;;  %s4022_s28 = sshll.u32 %s4237_s3, 4 }
 0x338   : > { %1547 = vmatpush.msra.mxu0 %v1520_v29  ;;  %1618 = vmatpush.msra.mxu3 %v4484_v24  ;;  %v1681_v61 = vsub.f32 %v1657_v41, %v1680_v56  ;;  %v1853_v63 = vsub.f32 %v1851_v55, %v1852_v31  ;;  %v2342_v52 = vsub.f32 %v2296_v35, %v4568_v44 }
 0x339   : > { %1404 = vmatmul.f32.vlgmr.msra.gmra.mxu2 %v4477_v19  ;;  %v4579_v39 = vsub.f32 %v2298_v36, %v4570_v40 }
 0x33a   : > { %1596 = vmatpush.msra.mxu2 %v1521_v33  ;;  %v1682_v0 = vand.u32 4294901760, %v1681_v61  ;;  %v1854_v4 = vand.u32 4294901760, %v1853_v63 }
 0x33c   : > { %v2613_v60 = vld.sshfl [vmem:[#allocation1 + $0x10] sm:$0xff pattern:$0x75316420]  ;;  %v1683_v6 = vsub.f32 %v1681_v61, %v1682_v0 }
 0x33d   : > { %v2612_v58 = vld.sshfl [vmem:[#allocation1 + $0x8] sm:$0xff pattern:$0x75316420]  ;;  %v2611_v59 = vld.sshfl [vmem:[#allocation1] sm:$0xff pattern:$0x75316420]  ;;  %1380 = vmatmul.f32.vlgmr.msra.gmra.mxu1 %v4467_v8 }
 0x33e   : > { %2616 = vrot.lane.b32.xlu1 %v2612_v58, %s4153_s22  ;;  %2614 = vrot.lane.b32.xlu0 %v2611_v59, %s4153_s22  ;;  %v1684_v9 = vand.u32 4294901760, %v1683_v6 }
 0x33f   : > { %1452 = vmatmul.f32.vlgmr.msrb.gmra.mxu0 %v4467_v8  ;;  %1526 = vmatmul.f32.vlgmr.msrb.gmra.mxu3 %v4467_v8 }
 0x340   : > { %1570 = vmatpush.msra.mxu1 %v4484_v24  ;;  %1679 = vmatpush.msrb.mxu0 %v1678_v48 }
 0x341   : > { %1755 = vmatpush.msrb.mxu3 %v1678_v48  ;;  %1500 = vmatmul.f32.vlgmr.msrb.gmra.mxu2 %v1353_v47 }
 0x342   : > { %1732 = vmatpush.msrb.mxu2 %v1705_v54  ;;  %2618 = vrot.lane.b32.xlu2 %v2613_v60, %s4153_s22  ;;  %s297_s22 = sand.u32 1, %s4142_s30  }
 0x343   : > { %s3921_s19 = scalar_lea.sflag [#allocation6], %s297_s22 }
 0x345   : > { %1474 = vmatmul.f32.vlgmr.msrb.gmra.mxu1 %v4467_v8 }
 0x346   : > { %3575 = vrot.lane.b32.xlu0 %v4406_v3, %s4154_s25  ;;  %1709 = vmatpush.msrb.mxu1 %v1708_v2  ;;  %s4000_s25 = sshll.u32 %s297_s22, 4 }
 0x347   : > { %1550 = vmatmul.f32.vlgmr.msra.gmra.mxu0 %v4477_v19  ;;  %1620 = vmatmul.f32.vlgmr.msra.gmra.mxu3 %v4467_v8 }
 0x348   : > { %1781 = vmatpush.msra.mxu0 %v1706_v57  ;;  %1855 = vmatpush.msra.mxu3 %v1854_v4 }
 0x349   : > { %1598 = vmatmul.f32.vlgmr.msra.gmra.mxu2 %v4467_v8  ;;  %v4010_v8 = vld [vmem:[%s4824_s6 + $0xc] sm:$0xf] }
 0x34a   : > { %1825 = vmatpush.msra.mxu2 %v1824_v53  ;;  %v1986_v10 = vsel %vm1009_vm10, %v4010_v8, 0 }
 0x34b   : > { %v4540_v15 = vand.u32 4294901760, %v1986_v10 }
 0x34d   : > { %1574 = vmatmul.f32.vlgmr.msra.gmra.mxu1 %v4487_v25  ;;  %v4545_v16 = vsub.f32 %v1986_v10, %v4540_v15 }
 0x34e   : > { %1803 = vmatpush.msra.mxu1 %v1678_v48 }
 0x34f   : > { %1685 = vmatmul.f32.vlgmr.msrb.gmra.mxu0 %v1684_v9  ;;  %1759 = vmatmul.f32.vlgmr.msrb.gmra.mxu3 %v1682_v0  ;;  %v4548_v20 = vand.u32 4294901760, %v4545_v16 }
 0x350   : > { %1878 = vmatpush.msrb.mxu0 %v1851_v55  ;;  %1949 = vmatpush.msrb.mxu3 %v1824_v53  ;;  %v2343_v55 = vand.u32 4294901760, %v2342_v52 }
 0x351   : > { %1735 = vmatmul.f32.vlgmr.msrb.gmra.mxu2 %v1681_v61  ;;  %v2012_v24 = vsub.f32 %v4545_v16, %v4548_v20 }
 0x352   : > { %1927 = vmatpush.msrb.mxu2 %v1852_v31  ;;  %v2344_v59 = vsub.f32 %v2342_v52, %v2343_v55 }
 0x353   : > { %v2013_v32 = vand.u32 4294901760, %v2012_v24 }
 0x354   : > { %v2345_v62 = vand.u32 4294901760, %v2344_v59 }
 0x355   : > { %1711 = vmatmul.f32.vlgmr.msrb.gmra.mxu1 %v1680_v56 }
 0x356   : > { %1901 = vmatpush.msrb.mxu1 %v1824_v53  ;;  %v4581_v53 = vand.u32 4294901760, %v2294_v49 }
 0x357   : > { %1783 = vmatmul.f32.vlgmr.msra.gmra.mxu0 %v1680_v56  ;;  %1857 = vmatmul.f32.vlgmr.msra.gmra.mxu3 %v1680_v56 }
 0x358   : > { %v4587_v57 = vsub.f32 %v2294_v49, %v4581_v53 }
 0x359   : > { %1831 = vmatmul.f32.vlgmr.msra.gmra.mxu2 %v1684_v9  ;;  %v3574_v9 = vld [vmem:[#allocation3 + $0xc] sm:$0xf] }
 0x35a   : > { %v4594_v60 = vand.u32 4294901760, %v4587_v57 }
 0x35c   : > { %v2320_v2 = vsub.f32 %v4587_v57, %v4594_v60 }
 0x35d   : > { %1805 = vmatmul.f32.vlgmr.msra.gmra.mxu1 %v1680_v56 }
 0x35f   : > { %1881 = vmatmul.f32.vlgmr.msrb.gmra.mxu0 %v1681_v61  ;;  %1951 = vmatmul.f32.vlgmr.msrb.gmra.mxu3 %v1680_v56 }
 0x361   : > { %1929 = vmatmul.f32.vlgmr.msrb.gmra.mxu2 %v1680_v56  ;;  %v2489_v56 = vand.u32 4294901760, %v4579_v39 }
 0x363   : > { %v2490_v31 = vsub.f32 %v4579_v39, %v2489_v56 }
 0x365   : > { %1905 = vmatmul.f32.vlgmr.msrb.gmra.mxu1 %v1682_v0  ;;  %v2491_v0 = vand.u32 4294901760, %v2490_v31 }
 0x388   : > { %v1978_v3 = vpop.permute.xlu2 %1977 }
 0x390   : > { %v2926_v11 = vpop.permute.xlu2 %2925 }
 0x391   : > { %v2927_v14 = vrot.slane %v2926_v11, 4 }
 0x393   : > { %v2928_v17 = vsel %vm450_vm0, %v2927_v14, %v2926_v11  ;;  %v2932_v18 = vmul.f32 %v2927_v14, %v2924_v5  ;;  %vm4832_vm0 = vmmov %vm4831_vm4  ;;  %v2321_v11 = vand.u32 4294901760, %v2320_v2 }
 0x394   : > { %v2931_v19 = vmul.f32 %v2928_v17, %v4423_v7  ;;  %vm4833_vm6 = vmmov %vm4832_vm0 }
 0x395   : > { %2939 = vst [vmem:[#allocation1 + $0x10] ss:$2 sm:$0xff] %v2932_v18 }
 0x396   : > { %2937 = vst [vmem:[#allocation1] ss:$2 sm:$0xff] %v2931_v19  ;;  %v4012_v19 = vld [vmem:[%s4824_s6 + $0x14] sm:$0xf] }
 0x39c   : > { %v2942_v22 = vld.sshfl [vmem:[#allocation1 + $0x10] sm:$0xff pattern:$0x75316420]  ;;  %v2619_v63 = vpop.permute.xlu2 %2618 }
 0x39d   : > { %2947 = vrot.lane.b32.xlu0 %v2942_v22, %s4155_s26  ;;  %3260 = vst [vmem:[#allocation1 + $0x10] ss:$2 sm:$0xff] %v3253_v21  ;;  %v2941_v23 = vld.sshfl [vmem:[#allocation1 + $0x8] sm:$0xff pattern:$0x75316420] }
 0x39e   : > { %2945 = vrot.lane.b32.xlu2 %v2941_v23, %s4155_s26  ;;  %v2940_v25 = vld.sshfl [vmem:[#allocation1] sm:$0xff pattern:$0x75316420]  ;;  %v1982_v26 = vpop.permute.xlu1 %1981 }
 0x39f   : > { %2943 = vrot.lane.b32.xlu1 %v2940_v25, %s4155_s26  ;;  %3258 = vst [vmem:[#allocation1] ss:$2 sm:$0xff] %v4423_v7  ;;  %v1980_v27 = vpop.permute.xlu0 %1979  ;;  %s4771_s26 = scalar_lea.vmem [#allocation5], %s4000_s25 }
 0x3a0   : > { %v1983_v28 = vsel %vm4832_vm0, %v1978_v3, %v1980_v27  ;;  %v1984_v29 = vsel %vm4833_vm6, %v1980_v27, %v1982_v26  ;;  %323 = vst [vmem:[%s4771_s26] sm:$0xf] %v4295_v12  ;;  %s3934_s14 = sshll.u32 %s4771_s26, 4  ;;  %s3935_s14 = int_to_ptr.vmem [resolvable:$true] %s3934_s14 }
 0x3a1   : > { %v1988_v30 = vsel %vm342_vm1, %v1983_v28, 0  ;;  %v1990_v1 = vsel %vm342_vm1, %v1984_v29, 0  ;;  %324 = vst [vmem:[%s4771_s26 + $0x8] sm:$0xf] %v4297_v13 }
 0x3a2   : > { %v2007_v33 = vand.u32 4294901760, %v1988_v30  ;;  %v2153_v34 = vand.u32 4294901760, %v1990_v1  ;;  %v1066_v24 = vpop.f32.mrf.mxu1  ;;  %v1090_v25 = vpop.f32.mrf.mxu2 }
 0x3a4   : > { %v2034_v37 = vsub.f32 %v1988_v30, %v2007_v33  ;;  %v2180_v38 = vsub.f32 %v1990_v1, %v2153_v34  ;;  %2008 = vmatpush.msra.mxu0 %v2007_v33  ;;  %2084 = vmatpush.msra.mxu3 %v2007_v33  ;;  %v3263_v42 = vld.sshfl [vmem:[#allocation1 + $0x10] sm:$0xff pattern:$0x75316420] }
 0x3a5   : > { %3268 = vrot.lane.b32.xlu0 %v3263_v42, %s4163_s13  ;;  %2014 = vmatmul.f32.vlgmr.msra.gmra.mxu0 %v2013_v32 }
 0x3a6   : > { %2088 = vmatmul.f32.vlgmr.msra.gmra.mxu3 %v4548_v20  ;;  %v3262_v45 = vld.sshfl [vmem:[#allocation1 + $0x8] sm:$0xff pattern:$0x75316420]  ;;  %v3261_v46 = vld.sshfl [vmem:[#allocation1] sm:$0xff pattern:$0x75316420]  ;;  %2061 = vmatpush.msra.mxu2 %v2034_v37 }
 0x3a7   : > { %3266 = vrot.lane.b32.xlu2 %v3262_v45, %s4163_s13  ;;  %3264 = vrot.lane.b32.xlu1 %v3261_v46, %s4163_s13  ;;  %v2035_v47 = vand.u32 4294901760, %v2034_v37  ;;  %v2181_v48 = vand.u32 4294901760, %v2180_v38 }
 0x3a8   : > { %2064 = vmatmul.f32.vlgmr.msra.gmra.mxu2 %v4545_v16 }
 0x3a9   : > { %2154 = vmatpush.msrb.mxu2 %v2153_v34  ;;  %2110 = vmatpush.msrb.mxu0 %v2035_v47  ;;  %v2036_v50 = vsub.f32 %v2034_v37, %v2035_v47  ;;  %v2182_v51 = vsub.f32 %v2180_v38, %v2181_v48 }
 0x3aa   : > { %v1160_v42 = vpop.f32.mrf.mxu1 }
 0x3ab   : > { %2256 = vmatpush.msra.mxu2 %v2181_v48  ;;  %2207 = vmatpush.msra.mxu0 %v2180_v38  ;;  %v2037_v54 = vand.u32 4294901760, %v2036_v50  ;;  %v2183_v41 = vand.u32 4294901760, %v2182_v51 }
 0x3ac   : > { %v1186_v43 = vpop.f32.mrf.mxu2 }
 0x3ad   : > { %2038 = vmatpush.msra.mxu1 %v2037_v54  ;;  %2184 = vmatpush.msrb.mxu3 %v2183_v41 }
 0x3ae   : > { %2040 = vmatmul.f32.vlgmr.msra.gmra.mxu1 %v4540_v15  ;;  %2112 = vmatmul.f32.vlgmr.msrb.gmra.mxu0 %v4540_v15 }
 0x3af   : > { %2132 = vmatpush.msrb.mxu1 %v2007_v33  ;;  %2186 = vmatmul.f32.vlgmr.msrb.gmra.mxu3 %v4540_v15  ;;  %v1114_v33 = vpop.f32.mrf.mxu3 }
 0x3b0   : > { %2278 = vmatpush.msra.mxu3 %v2153_v34  ;;  %2316 = vmatpush.msrb.mxu0 %v4568_v44  ;;  %v2615_v58 = vpop.permute.xlu0 %2614  ;;  %v2617_v61 = vpop.permute.xlu1 %2616 }
 0x3b1   : > { %2230 = vmatpush.msra.mxu1 %v2153_v34  ;;  %2160 = vmatmul.f32.vlgmr.msrb.gmra.mxu2 %v2013_v32  ;;  %v2621_v4 = vsel %vm434_vm13, %v2617_v61, %v2619_v63  ;;  %v2620_v6 = vsel %vm434_vm13, %v2615_v58, %v2617_v61  ;;  %vm4834_vm13 = vcmask 916480  }
 0x3b2   : > { %2392 = vmatpush.msrb.mxu3 %v4568_v44  ;;  %2369 = vmatpush.msrb.mxu2 %v2342_v52  ;;  %v2627_v10 = vsel %vm342_vm1, %v2621_v4, 0  ;;  %v2625_v5 = vsel %vm342_vm1, %v2620_v6, 0  ;;  %v1260_v52 = vpop.f32.mrf.mxu1 }
 0x3b3   : > { %v4614_v21 = vand.u32 4294901760, %v2625_v5 }
 0x3b5   : > { %v2671_v23 = vsub.f32 %v2625_v5, %v4614_v21 }
 0x3b6   : > { %2134 = vmatmul.f32.vlgmr.msrb.gmra.mxu1 %v4540_v15  ;;  %2210 = vmatmul.f32.vlgmr.msra.gmra.mxu0 %v4545_v16  ;;  %v4612_v16 = vand.u32 4294901760, %v2627_v10 }
 0x3b7   : > { %2280 = vmatmul.f32.vlgmr.msra.gmra.mxu3 %v4540_v15  ;;  %2346 = vmatpush.msrb.mxu1 %v2345_v62  ;;  %v2672_v28 = vand.u32 4294901760, %v2671_v23  ;;  %v1212_v47 = vpop.f32.mrf.mxu3 }
 0x3b8   : > { %2418 = vmatpush.msra.mxu0 %v2343_v55  ;;  %2492 = vmatpush.msra.mxu3 %v2491_v0  ;;  %v3576_v3 = vpop.permute.xlu0 %3575  ;;  %v4623_v22 = vsub.f32 %v2627_v10, %v4612_v16  ;;  %v1213_v48 = vadd.f32 %v1212_v47, %v1186_v43 }
 0x3b9   : > { %v3577_v8 = vrot.slane %v3576_v3, 4  ;;  %2258 = vmatmul.f32.vlgmr.msra.gmra.mxu2 %v4540_v15  ;;  %v2623_v15 = vsel %vm1009_vm10, %v4012_v19, 0  ;;  %v2673_v35 = vsub.f32 %v2671_v23, %v2672_v28 }
 0x3ba   : > { %2462 = vmatpush.msra.mxu2 %v4570_v40  ;;  %v2818_v27 = vand.u32 4294901760, %v4623_v22  ;;  %v1381_v58 = vpop.f32.mrf.mxu1 }
 0x3bb   : > { %v3578_v14 = vsel %vm457_vm14, %v3577_v8, %v3576_v3  ;;  %v3582_v17 = vmul.f32 %v3577_v8, %v3574_v9 }
 0x3bc   : > { %v3581_v18 = vmul.f32 %v3578_v14, %v4423_v7  ;;  %v1040_v7 = vpop.f32.mrf.mxu0  ;;  %v2819_v37 = vsub.f32 %v4623_v22, %v2818_v27 }
 0x3bd   : > { %3589 = vst [vmem:[#allocation1 + $0x10] ss:$2 sm:$0xff] %v3582_v17  ;;  %v1067_v29 = vadd.f32 %v1066_v24, %v1040_v7 }
 0x3be   : > { %3587 = vst [vmem:[#allocation1] ss:$2 sm:$0xff] %v3581_v18  ;;  %2234 = vmatmul.f32.vlgmr.msra.gmra.mxu1 %v4548_v20  ;;  %2322 = vmatmul.f32.vlgmr.msrb.gmra.mxu0 %v2321_v11  ;;  %v4627_v20 = vand.u32 4294901760, %v2623_v15  ;;  %v2820_v45 = vand.u32 4294901760, %v2819_v37 }
 0x3bf   : > { %2396 = vmatmul.f32.vlgmr.msrb.gmra.mxu3 %v4594_v60  ;;  %2440 = vmatpush.msra.mxu1 %v4568_v44  ;;  %v1091_v36 = vadd.f32 %v1090_v25, %v1067_v29  ;;  %v2674_v44 = vand.u32 4294901760, %v2673_v35  ;;  %v1306_v55 = vpop.f32.mrf.mxu3 }
 0x3c0   : > { %2515 = vmatpush.msrb.mxu0 %v4579_v39  ;;  %2586 = vmatpush.msrb.mxu3 %v4570_v40  ;;  %v4634_v32 = vsub.f32 %v2623_v15, %v4627_v20  ;;  %v1284_v39 = vpop.f32.mrf.mxu2 }
 0x3c1   : > { %2372 = vmatmul.f32.vlgmr.msrb.gmra.mxu2 %v4587_v57 }
 0x3c2   : > { %2564 = vmatpush.msrb.mxu2 %v2489_v56  ;;  %v4644_v38 = vand.u32 4294901760, %v4634_v32  ;;  %v1475_v6 = vpop.f32.mrf.mxu1 }
 0x3c4   : > { %v3592_v26 = vld.sshfl [vmem:[#allocation1 + $0x10] sm:$0xff pattern:$0x75316420]  ;;  %v1138_v34 = vpop.f32.mrf.mxu0  ;;  %v2649_v46 = vsub.f32 %v4634_v32, %v4644_v38 }
 0x3c5   : > { %3597 = vrot.lane.b32.xlu0 %v3592_v26, %s4158_s11  ;;  %v3591_v30 = vld.sshfl [vmem:[#allocation1 + $0x8] sm:$0xff pattern:$0x75316420]  ;;  %v3590_v1 = vld.sshfl [vmem:[#allocation1] sm:$0xff pattern:$0x75316420] }
 0x3c6   : > { %2348 = vmatmul.f32.vlgmr.msrb.gmra.mxu1 %v4581_v53  ;;  %2420 = vmatmul.f32.vlgmr.msra.gmra.mxu0 %v4581_v53  ;;  %v2650_v51 = vand.u32 4294901760, %v2649_v46 }
 0x3c7   : > { %2494 = vmatmul.f32.vlgmr.msra.gmra.mxu3 %v4581_v53  ;;  %2538 = vmatpush.msrb.mxu1 %v4570_v40  ;;  %v1115_v40 = vadd.f32 %v1114_v33, %v1091_v36  ;;  %v1429_v62 = vpop.f32.mrf.mxu3 }
 0x3c8   : > { %2645 = vmatpush.msra.mxu0 %v4614_v21  ;;  %2721 = vmatpush.msra.mxu3 %v4614_v21  ;;  %v1405_v59 = vpop.f32.mrf.mxu2 }
 0x3c9   : > { %3595 = vrot.lane.b32.xlu2 %v3591_v30, %s4158_s11  ;;  %3593 = vrot.lane.b32.xlu1 %v3590_v1, %s4158_s11  ;;  %v1139_v50 = vadd.f32 %v1138_v34, %v1115_v40  ;;  %s3932_s11 = scalar_lea.hbm %s4826_s8, %s4022_s28 }
 0x3ca   : > { %2468 = vmatmul.f32.vlgmr.msra.gmra.mxu2 %v2321_v11  ;;  %v1575_v17 = vpop.f32.mrf.mxu1  ;;  %s3936_s18 = sshll.u32 %s3932_s11, 4  ;;  %s3937_s18 = int_to_ptr.hbm [resolvable:$true] %s3936_s18 }
 0x3cb   : > { %2698 = vmatpush.msra.mxu2 %v2671_v23  ;;  %v1161_v41 = vadd.f32 %v1160_v42, %v1139_v50  ;;  %s4102_s20 = sshra.s32 %s3937_s18, 4  ;;  %s4103_s20 = int_to_ptr.hbm [resolvable:$true] %s4102_s20 }
 0x3cc   : > { %v1236_v49 = vpop.f32.mrf.mxu0  ;;  %s4104_s3 = scalar_lea.hbm %s4103_s20, 16  ;;  %p4109_p0 = scmp.lt.s32.totalorder %s4103_s20, %s4826_s8 }
 0x3cd   : > { %v1237_v54 = vadd.f32 %v1236_v49, %v1213_v48  ;;  %p4105_p11 = scmp.ne.s32.totalorder %s4103_s20, %s4104_s3  ;;  %p4110_p1 = scmp.lt.s32.totalorder %s4108_s23, %s4104_s3 }
 0x3ce   : > { %2442 = vmatmul.f32.vlgmr.msra.gmra.mxu1 %v4581_v53  ;;  %2518 = vmatmul.f32.vlgmr.msrb.gmra.mxu0 %v4587_v57 }
 0x3cf   : > { %2588 = vmatmul.f32.vlgmr.msrb.gmra.mxu3 %v4581_v53  ;;  %2675 = vmatpush.msra.mxu1 %v2674_v44  ;;  %v1261_v56 = vadd.f32 %v1260_v52, %v1237_v54  ;;  %v1527_v10 = vpop.f32.mrf.mxu3  ;;  %p4106_p12 = pnand %p4105_p11, %p4254_p5  ;;  %p4111_p2 = por %p4110_p1, %p4109_p0 }
 0x3d0   : > { %2747 = vmatpush.msrb.mxu0 %v2672_v28  ;;  %2821 = vmatpush.msrb.mxu3 %v2820_v45  ;;  %v1501_v9 = vpop.f32.mrf.mxu2 }
 0x3d1   : > { %v1285_v31 = vadd.f32 %v1284_v39, %v1261_v56  ;;  %p4107_p13 = pneg %p4106_p12 }
 0x3d2   : > { %2566 = vmatmul.f32.vlgmr.msrb.gmra.mxu2 %v4581_v53 }
 0x3d3   : > { %2791 = vmatpush.msrb.mxu2 %v4612_v16  ;;  %v1307_v63 = vadd.f32 %v1306_v55, %v1285_v31  ;;  %p4112_p3 = pnand %p4111_p2, %p4107_p13 }
 0x3d4   : > { %v1355_v53 = vpop.f32.mrf.mxu0 }
 0x3d5   : > { %v1356_v57 = vadd.f32 %v1355_v53, %v1161_v41  ;;  %v1502_v3 = vadd.f32 %v1501_v9, %v1307_v63 }
 0x3d6   : > { %2542 = vmatmul.f32.vlgmr.msrb.gmra.mxu1 %v4594_v60  ;;  %2651 = vmatmul.f32.vlgmr.msra.gmra.mxu0 %v2650_v51 }
 0x3d7   : > { %2725 = vmatmul.f32.vlgmr.msra.gmra.mxu3 %v4644_v38  ;;  %2769 = vmatpush.msrb.mxu1 %v4614_v21  ;;  %v1382_v60 = vadd.f32 %v1381_v58, %v1356_v57  ;;  %v1528_v5 = vadd.f32 %v1527_v10, %v1502_v3  ;;  %v1621_v21 = vpop.f32.mrf.mxu3 }
 0x3d8   : > { %2844 = vmatpush.msra.mxu0 %v4623_v22  ;;  %2915 = vmatpush.msra.mxu3 %v4612_v16  ;;  %v1599_v19 = vpop.f32.mrf.mxu2  ;;  %v1712_v22 = vpop.f32.mrf.mxu1 }
 0x3d9   : > { %v1406_v61 = vadd.f32 %v1405_v59, %v1382_v60  ;;  %v4014_v60 = vld [vmem:[%s4824_s6 + $0x1c] sm:$0xf] }
 0x3da   : > { %2701 = vmatmul.f32.vlgmr.msra.gmra.mxu2 %v4634_v32  ;;  %v3273_v9 = vsel %vm1009_vm10, %v4014_v60, 0 }
 0x3db   : > { %2893 = vmatpush.msra.mxu2 %v2818_v27  ;;  %v1430_v0 = vadd.f32 %v1429_v62, %v1406_v61 }
 0x3dc   : > { %v1453_v2 = vpop.f32.mrf.mxu0 }
 0x3dd   : > { %v1454_v4 = vadd.f32 %v1453_v2, %v1430_v0 }
 0x3de   : > { %2677 = vmatmul.f32.vlgmr.msra.gmra.mxu1 %v4627_v20  ;;  %2749 = vmatmul.f32.vlgmr.msrb.gmra.mxu0 %v4627_v20 }
 0x3df   : > { %2867 = vmatpush.msra.mxu1 %v4612_v16  ;;  %2823 = vmatmul.f32.vlgmr.msrb.gmra.mxu3 %v4627_v20  ;;  %v1476_v8 = vadd.f32 %v1475_v6, %v1454_v4  ;;  %v1760_v25 = vpop.f32.mrf.mxu3 }
 0x3e0   : > { %v1736_v23 = vpop.f32.mrf.mxu2  ;;  %v1806_v29 = vpop.f32.mrf.mxu1 }
 0x3e2   : > { %2797 = vmatmul.f32.vlgmr.msrb.gmra.mxu2 %v2650_v51 }
 0x3e4   : > { %v1551_v11 = vpop.f32.mrf.mxu0 }
 0x3e5   : > { %v1552_v14 = vadd.f32 %v1551_v11, %v1528_v5 }
 0x3e6   : > { %2771 = vmatmul.f32.vlgmr.msrb.gmra.mxu1 %v4627_v20  ;;  %2847 = vmatmul.f32.vlgmr.msra.gmra.mxu0 %v4634_v32 }
 0x3e7   : > { %2917 = vmatmul.f32.vlgmr.msra.gmra.mxu3 %v4627_v20  ;;  %v1576_v18 = vadd.f32 %v1575_v17, %v1552_v14  ;;  %v1858_v33 = vpop.f32.mrf.mxu3 }
 0x3e8   : > { %v1832_v32 = vpop.f32.mrf.mxu2  ;;  %v1906_v44 = vpop.f32.mrf.mxu1 }
 0x3e9   : > { %v1600_v16 = vadd.f32 %v1599_v19, %v1576_v18  ;;  %v1859_v35 = vadd.f32 %v1858_v33, %v1832_v32  ;;  %v4702_v18 = vand.u32 4294901760, %v3273_v9 }
 0x3ea   : > { %2895 = vmatmul.f32.vlgmr.msra.gmra.mxu2 %v4627_v20  ;;  %v4013_v20 = vld [vmem:[%s4824_s6 + $0x18] sm:$0xf] }
 0x3eb   : > { %v1622_v15 = vadd.f32 %v1621_v21, %v1600_v16  ;;  %v2952_v30 = vsel %vm1009_vm10, %v4013_v20, 0 }
 0x3ec   : > { %v1686_v7 = vpop.f32.mrf.mxu0  ;;  %v4672_v36 = vand.u32 4294901760, %v2952_v30 }
 0x3ed   : > { %v1713_v24 = vadd.f32 %v1712_v22, %v1686_v7  ;;  %v4708_v22 = vsub.f32 %v3273_v9, %v4702_v18 }
 0x3ee   : > { %2871 = vmatmul.f32.vlgmr.msra.gmra.mxu1 %v4644_v38  ;;  %v4677_v43 = vsub.f32 %v2952_v30, %v4672_v36 }
 0x3ef   : > { %v1737_v26 = vadd.f32 %v1736_v23, %v1713_v24  ;;  %v1952_v48 = vpop.f32.mrf.mxu3 }
 0x3f0   : > { %v1930_v45 = vpop.f32.mrf.mxu2  ;;  %v4680_v47 = vand.u32 4294901760, %v4677_v43 }
 0x3f1   : > { %v1761_v27 = vadd.f32 %v1760_v25, %v1737_v26 }
 0x3f2   : > { %v2978_v39 = vsub.f32 %v4677_v43, %v4680_v47 }
 0x3f4   : > { %v1784_v28 = vpop.f32.mrf.mxu0  ;;  %v2979_v58 = vand.u32 4294901760, %v2978_v39 }
 0x3f5   : > { %v1785_v1 = vadd.f32 %v1784_v28, %v1761_v27  ;;  %v4712_v27 = vand.u32 4294901760, %v4708_v22 }
 0x3f7   : > { %v1807_v34 = vadd.f32 %v1806_v29, %v1785_v1  ;;  %v3299_v29 = vsub.f32 %v4708_v22, %v4712_v27 }
 0x3f8   : > { %v2946_v50 = vpop.permute.xlu2 %2945 }
 0x3f9   : > { %v4674_v37 = vadd.f32 %v1807_v34, %v1476_v8  ;;  %v3300_v33 = vand.u32 4294901760, %v3299_v29 }
 0x3fc   : > { %v1882_v38 = vpop.f32.mrf.mxu0 }
 0x3fd   : > { %v1883_v42 = vadd.f32 %v1882_v38, %v1859_v35  ;;  %v4015_v38 = vld [vmem:[%s4824_s6 + $0x20] sm:$0xf] }
 0x3ff   : > { %v1907_v40 = vadd.f32 %v1906_v44, %v1883_v42 }
 0x401   : > { %v1931_v46 = vadd.f32 %v1930_v45, %v1907_v40  ;;  %v3267_v63 = vpop.permute.xlu2 %3266 }
 0x403   : > { %v1953_v49 = vadd.f32 %v1952_v48, %v1931_v46 }
 0x405   : > { %v4682_v51 = vadd.f32 %v1953_v49, %v1622_v15 }
 0x40f   : > { %v2948_v52 = vpop.permute.xlu0 %2947 }
 0x410   : > { %v2950_v54 = vsel %vm427_vm12, %v2946_v50, %v2948_v52 }
 0x411   : > { %v2956_v41 = vsel %vm342_vm1, %v2950_v54, 0  ;;  %v2944_v55 = vpop.permute.xlu1 %2943 }
 0x412   : > { %v3119_v56 = vand.u32 4294901760, %v2956_v41  ;;  %v2949_v53 = vsel %vm427_vm12, %v2944_v55, %v2946_v50  ;;  %vm4835_vm12 = vmmov %vm4834_vm13 }
 0x413   : > { %v2954_v57 = vsel %vm342_vm1, %v2949_v53, 0 }
 0x414   : > { %v3146_v59 = vsub.f32 %v2956_v41, %v3119_v56  ;;  %v2973_v31 = vand.u32 4294901760, %v2954_v57 }
 0x416   : > { %v3000_v61 = vsub.f32 %v2954_v57, %v2973_v31  ;;  %2974 = vmatpush.msrb.mxu0 %v2973_v31  ;;  %3050 = vmatpush.msrb.mxu3 %v2973_v31  ;;  %v3147_v62 = vand.u32 4294901760, %v3146_v59 }
 0x417   : > { %2980 = vmatmul.f32.vlgmr.msrb.gmra.mxu0 %v2979_v58  ;;  %3054 = vmatmul.f32.vlgmr.msrb.gmra.mxu3 %v4680_v47  ;;  %v3269_v0 = vpop.permute.xlu0 %3268 }
 0x418   : > { %v3271_v2 = vsel %vm4834_vm13, %v3267_v63, %v3269_v0  ;;  %3027 = vmatpush.msrb.mxu2 %v3000_v61  ;;  %v3001_v4 = vand.u32 4294901760, %v3000_v61  ;;  %v3148_v6 = vsub.f32 %v3146_v59, %v3147_v62 }
 0x419   : > { %v3277_v3 = vsel %vm342_vm1, %v3271_v2, 0  ;;  %v3265_v8 = vpop.permute.xlu1 %3264  ;;  %3030 = vmatmul.f32.vlgmr.msrb.gmra.mxu2 %v4677_v43 }
 0x41a   : > { %v4698_v10 = vand.u32 4294901760, %v3277_v3  ;;  %v3270_v5 = vsel %vm4835_vm12, %v3265_v8, %v3267_v63  ;;  %3120 = vmatpush.msra.mxu2 %v3119_v56  ;;  %3076 = vmatpush.msra.mxu0 %v3001_v4  ;;  %v3149_v11 = vand.u32 4294901760, %v3148_v6  ;;  %v3002_v14 = vsub.f32 %v3000_v61, %v3001_v4 }
 0x41b   : > { %v3275_v17 = vsel %vm342_vm1, %v3270_v5, 0 }
 0x41c   : > { %3222 = vmatpush.msrb.mxu2 %v3147_v62  ;;  %3173 = vmatpush.msrb.mxu0 %v3146_v59  ;;  %v3467_v19 = vsub.f32 %v3277_v3, %v4698_v10  ;;  %v3294_v16 = vand.u32 4294901760, %v3275_v17  ;;  %v3003_v21 = vand.u32 4294901760, %v3002_v14 }
 0x41d   : > { %3150 = vmatpush.msra.mxu3 %v3149_v11 }
 0x41e   : > { %v3321_v15 = vsub.f32 %v3275_v17, %v3294_v16  ;;  %3004 = vmatpush.msrb.mxu1 %v3003_v21  ;;  %v3468_v7 = vand.u32 4294901760, %v3467_v19 }
 0x41f   : > { %3244 = vmatpush.msrb.mxu3 %v3119_v56  ;;  %3006 = vmatmul.f32.vlgmr.msrb.gmra.mxu1 %v4672_v36 }
 0x420   : > { %3078 = vmatmul.f32.vlgmr.msra.gmra.mxu0 %v4672_v36  ;;  %v3322_v23 = vand.u32 4294901760, %v3321_v15  ;;  %3098 = vmatpush.msra.mxu1 %v2973_v31  ;;  %v3469_v26 = vsub.f32 %v3467_v19, %v3468_v7 }
 0x421   : > { %3152 = vmatmul.f32.vlgmr.msra.gmra.mxu3 %v4672_v36  ;;  %3295 = vmatpush.msra.mxu0 %v3294_v16 }
 0x422   : > { %3371 = vmatpush.msra.mxu3 %v3294_v16  ;;  %3196 = vmatpush.msrb.mxu1 %v3119_v56  ;;  %v3323_v24 = vsub.f32 %v3321_v15, %v3322_v23  ;;  %v2015_v25 = vpop.f32.mrf.mxu0  ;;  %v3470_v28 = vand.u32 4294901760, %v3469_v26 }
 0x423   : > { %3126 = vmatmul.f32.vlgmr.msra.gmra.mxu2 %v2979_v58  ;;  %v3596_v39 = vpop.permute.xlu2 %3595 }
 0x424   : > { %3348 = vmatpush.msra.mxu2 %v3321_v15  ;;  %v3324_v20 = vand.u32 4294901760, %v3323_v24 }
 0x427   : > { %3100 = vmatmul.f32.vlgmr.msra.gmra.mxu1 %v4672_v36 }
 0x428   : > { %3176 = vmatmul.f32.vlgmr.msrb.gmra.mxu0 %v4677_v43  ;;  %3325 = vmatpush.msra.mxu1 %v3324_v20 }
 0x429   : > { %3246 = vmatmul.f32.vlgmr.msrb.gmra.mxu3 %v4672_v36  ;;  %3397 = vmatpush.msrb.mxu0 %v3322_v23  ;;  %v2089_v30 = vpop.f32.mrf.mxu3 }
 0x42a   : > { %3471 = vmatpush.msrb.mxu3 %v3470_v28 }
 0x42b   : > { %3224 = vmatmul.f32.vlgmr.msrb.gmra.mxu2 %v4672_v36  ;;  %v2041_v1 = vpop.f32.mrf.mxu1  ;;  %v2065_v32 = vpop.f32.mrf.mxu2  ;;  %v3602_v36 = vsel %vm1009_vm10, %v4015_v38, 0 }
 0x42c   : > { %3441 = vmatpush.msrb.mxu2 %v4698_v10  ;;  %v2042_v34 = vadd.f32 %v2041_v1, %v2015_v25  ;;  %v2113_v35 = vpop.f32.mrf.mxu0  ;;  %v4729_v46 = vand.u32 4294901760, %v3602_v36 }
 0x42e   : > { %v2066_v42 = vadd.f32 %v2065_v32, %v2042_v34  ;;  %v4737_v41 = vsub.f32 %v3602_v36, %v4729_v46 }
 0x42f   : > { %3200 = vmatmul.f32.vlgmr.msrb.gmra.mxu1 %v4680_v47 }
 0x430   : > { %3301 = vmatmul.f32.vlgmr.msra.gmra.mxu0 %v3300_v33  ;;  %3419 = vmatpush.msrb.mxu1 %v3294_v16  ;;  %v2090_v43 = vadd.f32 %v2089_v30, %v2066_v42  ;;  %v4744_v31 = vand.u32 4294901760, %v4737_v41 }
 0x431   : > { %3375 = vmatmul.f32.vlgmr.msra.gmra.mxu3 %v4712_v27  ;;  %3494 = vmatpush.msra.mxu0 %v3467_v19 }
 0x432   : > { %3565 = vmatpush.msra.mxu3 %v4698_v10  ;;  %v2114_v44 = vadd.f32 %v2113_v35, %v2090_v43  ;;  %v2187_v40 = vpop.f32.mrf.mxu3  ;;  %v3628_v3 = vsub.f32 %v4737_v41, %v4744_v31 }
 0x433   : > { %3351 = vmatmul.f32.vlgmr.msra.gmra.mxu2 %v4708_v22  ;;  %v2135_v45 = vpop.f32.mrf.mxu1 }
 0x434   : > { %3543 = vmatpush.msra.mxu2 %v3468_v7  ;;  %v2136_v48 = vadd.f32 %v2135_v45, %v2114_v44  ;;  %v2211_v47 = vpop.f32.mrf.mxu0  ;;  %v2161_v49 = vpop.f32.mrf.mxu2  ;;  %v3629_v21 = vand.u32 4294901760, %v3628_v3 }
 0x435   : > { %v2188_v52 = vadd.f32 %v2187_v40, %v2161_v49 }
 0x436   : > { %v4732_v50 = vadd.f32 %v2136_v48, %v4674_v37 }
 0x437   : > { %3327 = vmatmul.f32.vlgmr.msra.gmra.mxu1 %v4702_v18  ;;  %v3598_v54 = vpop.permute.xlu0 %3597  ;;  %v2212_v56 = vadd.f32 %v2211_v47, %v2188_v52 }
 0x438   : > { %3399 = vmatmul.f32.vlgmr.msrb.gmra.mxu0 %v4702_v18  ;;  %3517 = vmatpush.msra.mxu1 %v4698_v10  ;;  %v3600_v55 = vsel %vm419_vm2, %v3596_v39, %v3598_v54 }
 0x439   : > { %3473 = vmatmul.f32.vlgmr.msrb.gmra.mxu3 %v4702_v18  ;;  %v3606_v37 = vsel %vm342_vm1, %v3600_v55, 0 }
 0x43a   : > { %v3769_v53 = vand.u32 4294901760, %v3606_v37  ;;  %v2281_v57 = vpop.f32.mrf.mxu3 }
 0x43b   : > { %3447 = vmatmul.f32.vlgmr.msrb.gmra.mxu2 %v3300_v33  ;;  %v3594_v58 = vpop.permute.xlu1 %3593  ;;  %v2235_v59 = vpop.f32.mrf.mxu1 }
 0x43c   : > { %v3796_v60 = vsub.f32 %v3606_v37, %v3769_v53  ;;  %v3599_v61 = vsel %vm419_vm2, %v3594_v58, %v3596_v39  ;;  %v2236_v62 = vadd.f32 %v2235_v59, %v2212_v56  ;;  %v2323_v63 = vpop.f32.mrf.mxu0  ;;  %v2259_v2 = vpop.f32.mrf.mxu2 }
 0x43d   : > { %v3604_v0 = vsel %vm342_vm1, %v3599_v61, 0 }
 0x43e   : > { %v3797_v4 = vand.u32 4294901760, %v3796_v60  ;;  %v3623_v6 = vand.u32 4294901760, %v3604_v0  ;;  %v2260_v9 = vadd.f32 %v2259_v2, %v2236_v62 }
 0x43f   : > { %3421 = vmatmul.f32.vlgmr.msrb.gmra.mxu1 %v4702_v18 }
 0x440   : > { %3497 = vmatmul.f32.vlgmr.msra.gmra.mxu0 %v4708_v22  ;;  %v3650_v8 = vsub.f32 %v3604_v0, %v3623_v6  ;;  %3700 = vmatpush.msrb.mxu3 %v3623_v6  ;;  %v2282_v10 = vadd.f32 %v2281_v57, %v2260_v9  ;;  %v3798_v5 = vsub.f32 %v3796_v60, %v3797_v4 }
 0x441   : > { %3624 = vmatpush.msrb.mxu0 %v3623_v6  ;;  %3567 = vmatmul.f32.vlgmr.msra.gmra.mxu3 %v4702_v18 }
 0x442   : > { %v2285_v11 = vadd.f32 %v2282_v10, %v4682_v51  ;;  %3677 = vmatpush.msrb.mxu2 %v3650_v8  ;;  %v3651_v14 = vand.u32 4294901760, %v3650_v8  ;;  %v3799_v17 = vand.u32 4294901760, %v3798_v5  ;;  %v2397_v19 = vpop.f32.mrf.mxu3  ;;  %v3902_v51 = vld [vmem:[%s4825_s7] sm:$0xf] }
 0x443   : > { %3545 = vmatmul.f32.vlgmr.msra.gmra.mxu2 %v4702_v18  ;;  %v2349_v16 = vpop.f32.mrf.mxu1  ;;  %3905 = vperm.xlu1 %4079, %v3902_v51  }
 0x444   : > { %3770 = vmatpush.msra.mxu2 %v3769_v53  ;;  %3726 = vmatpush.msra.mxu0 %v3651_v14  ;;  %v2350_v15 = vadd.f32 %v2349_v16, %v2323_v63  ;;  %v3652_v7 = vsub.f32 %v3650_v8, %v3651_v14  ;;  %v2421_v22 = vpop.f32.mrf.mxu0  ;;  %v2373_v23 = vpop.f32.mrf.mxu2 }
 0x445   : > { %3800 = vmatpush.msra.mxu3 %v3799_v17 }
 0x446   : > { %v2374_v24 = vadd.f32 %v2373_v23, %v2350_v15  ;;  %v3653_v25 = vand.u32 4294901760, %v3652_v7 }
 0x447   : > { %3521 = vmatmul.f32.vlgmr.msra.gmra.mxu1 %v4712_v27 }
 0x448   : > { %3630 = vmatmul.f32.vlgmr.msrb.gmra.mxu0 %v3629_v21  ;;  %3654 = vmatpush.msrb.mxu1 %v3653_v25  ;;  %v2398_v18 = vadd.f32 %v2397_v19, %v2374_v24 }
 0x449   : > { %3823 = vmatpush.msrb.mxu0 %v3796_v60  ;;  %3704 = vmatmul.f32.vlgmr.msrb.gmra.mxu3 %v4744_v31 }
 0x44a   : > { %3748 = vmatpush.msra.mxu1 %v3623_v6  ;;  %3894 = vmatpush.msrb.mxu3 %v3769_v53  ;;  %v2422_v26 = vadd.f32 %v2421_v22, %v2398_v18  ;;  %v2495_v20 = vpop.f32.mrf.mxu3 }
 0x44b   : > { %3680 = vmatmul.f32.vlgmr.msrb.gmra.mxu2 %v4737_v41  ;;  %v2443_v28 = vpop.f32.mrf.mxu1 }
 0x44c   : > { %3872 = vmatpush.msrb.mxu2 %v3797_v4  ;;  %v2444_v27 = vadd.f32 %v2443_v28, %v2422_v26  ;;  %v2519_v29 = vpop.f32.mrf.mxu0 }
 0x44d   : > { %v2469_v30 = vpop.f32.mrf.mxu2 }
 0x44e   : > { %v2592_v1 = vadd.f32 %v2444_v27, %v4732_v50  ;;  %v2496_v32 = vadd.f32 %v2495_v20, %v2469_v30 }
 0x44f   : > { %3656 = vmatmul.f32.vlgmr.msrb.gmra.mxu1 %v4729_v46 }
 0x450   : > { %3728 = vmatmul.f32.vlgmr.msra.gmra.mxu0 %v4729_v46  ;;  %3846 = vmatpush.msrb.mxu1 %v3769_v53  ;;  %v2520_v33 = vadd.f32 %v2519_v29, %v2496_v32 }
 0x451   : > { %3802 = vmatmul.f32.vlgmr.msra.gmra.mxu3 %v4729_v46 }
 0x452   : > { %v2589_v34 = vpop.f32.mrf.mxu3 }
 0x453   : > { %3776 = vmatmul.f32.vlgmr.msra.gmra.mxu2 %v3629_v21  ;;  %v2543_v35 = vpop.f32.mrf.mxu1 }
 0x454   : > { %v2544_v38 = vadd.f32 %v2543_v35, %v2520_v33  ;;  %v2652_v42 = vpop.f32.mrf.mxu0 }
 0x455   : > { %v2567_v43 = vpop.f32.mrf.mxu2 }
 0x456   : > { %v2568_v36 = vadd.f32 %v2567_v43, %v2544_v38 }
 0x457   : > { %3750 = vmatmul.f32.vlgmr.msra.gmra.mxu1 %v4729_v46 }
 0x458   : > { %3826 = vmatmul.f32.vlgmr.msrb.gmra.mxu0 %v4737_v41  ;;  %v2590_v44 = vadd.f32 %v2589_v34, %v2568_v36 }
 0x459   : > { %3896 = vmatmul.f32.vlgmr.msrb.gmra.mxu3 %v4729_v46 }
 0x45a   : > { %v2593_v40 = vadd.f32 %v2590_v44, %v2285_v11  ;;  %v2726_v45 = vpop.f32.mrf.mxu3 }
 0x45b   : > { %3874 = vmatmul.f32.vlgmr.msrb.gmra.mxu2 %v4729_v46  ;;  %v2678_v48 = vpop.f32.mrf.mxu1 }
 0x45c   : > { %v2679_v47 = vadd.f32 %v2678_v48, %v2652_v42  ;;  %v2750_v49 = vpop.f32.mrf.mxu0 }
 0x45d   : > { %v2702_v50 = vpop.f32.mrf.mxu2 }
 0x45e   : > { %v2703_v52 = vadd.f32 %v2702_v50, %v2679_v47 }
 0x45f   : > { %3850 = vmatmul.f32.vlgmr.msrb.gmra.mxu1 %v4744_v31 }
 0x460   : > { %v2727_v39 = vadd.f32 %v2726_v45, %v2703_v52 }
 0x462   : > { %v2751_v54 = vadd.f32 %v2750_v49, %v2727_v39  ;;  %v2824_v55 = vpop.f32.mrf.mxu3 }
 0x463   : > { %v2772_v41 = vpop.f32.mrf.mxu1 }
 0x464   : > { %v2773_v56 = vadd.f32 %v2772_v41, %v2751_v54  ;;  %v2848_v12 = vpop.f32.mrf.mxu0 }
 0x465   : > { %v2798_v37 = vpop.f32.mrf.mxu2 }
 0x466   : > { %v2921_v53 = vadd.f32 %v2773_v56, %v2592_v1  ;;  %v2825_v57 = vadd.f32 %v2824_v55, %v2798_v37 }
 0x468   : > { %v2849_v58 = vadd.f32 %v2848_v12, %v2825_v57 }
 0x46a   : > { %v2918_v60 = vpop.f32.mrf.mxu3 }
 0x46b   : > { %v2872_v13 = vpop.f32.mrf.mxu1 }
 0x46c   : > { %v2873_v59 = vadd.f32 %v2872_v13, %v2849_v58 }
 0x46d   : > { %v2896_v46 = vpop.f32.mrf.mxu2 }
 0x46e   : > { %v2897_v61 = vadd.f32 %v2896_v46, %v2873_v59 }
 0x470   : > { %v2919_v62 = vadd.f32 %v2918_v60, %v2897_v61 }
 0x472   : > { %v4779_v63 = vadd.f32 %v2919_v62, %v2593_v40 }
 0x494   : > { %v2981_v0 = vpop.f32.mrf.mxu0 }
 0x49a   : > { %v3055_v31 = vpop.f32.mrf.mxu3 }
 0x49c   : > { %v3007_v2 = vpop.f32.mrf.mxu1  ;;  %v3031_v4 = vpop.f32.mrf.mxu2 }
 0x49d   : > { %v3079_v6 = vpop.f32.mrf.mxu0  ;;  %v3008_v25 = vadd.f32 %v3007_v2, %v2981_v0 }
 0x49f   : > { %v3032_v18 = vadd.f32 %v3031_v4, %v3008_v25 }
 0x4a1   : > { %v3056_v30 = vadd.f32 %v3055_v31, %v3032_v18 }
 0x4a3   : > { %v3080_v32 = vadd.f32 %v3079_v6, %v3056_v30 }
 0x4a4   : > { %v3153_v9 = vpop.f32.mrf.mxu3  ;;  %v3101_v3 = vpop.f32.mrf.mxu1 }
 0x4a5   : > { %v3177_v10 = vpop.f32.mrf.mxu0  ;;  %v3102_v44 = vadd.f32 %v3101_v3, %v3080_v32 }
 0x4a6   : > { %v3127_v8 = vpop.f32.mrf.mxu2 }
 0x4a7   : > { %v3154_v35 = vadd.f32 %v3153_v9, %v3127_v8  ;;  %v3250_v50 = vadd.f32 %v3102_v44, %v2921_v53 }
 0x4a9   : > { %v3178_v48 = vadd.f32 %v3177_v10, %v3154_v35 }
 0x4ac   : > { %v3247_v5 = vpop.f32.mrf.mxu3  ;;  %v3201_v11 = vpop.f32.mrf.mxu1 }
 0x4ad   : > { %v3302_v17 = vpop.f32.mrf.mxu0  ;;  %v3202_v52 = vadd.f32 %v3201_v11, %v3178_v48 }
 0x4ae   : > { %v3225_v14 = vpop.f32.mrf.mxu2 }
 0x4af   : > { %v3226_v13 = vadd.f32 %v3225_v14, %v3202_v52 }
 0x4b1   : > { %v3248_v0 = vadd.f32 %v3247_v5, %v3226_v13 }
 0x4b3   : > { %v3251_v10 = vadd.f32 %v3248_v0, %v4779_v63 }
 0x4b4   : > { %v3376_v19 = vpop.f32.mrf.mxu3  ;;  %v3328_v16 = vpop.f32.mrf.mxu1 }
 0x4b5   : > { %v3400_v15 = vpop.f32.mrf.mxu0  ;;  %v3329_v51 = vadd.f32 %v3328_v16, %v3302_v17  ;;  %v3906_v58 = vpop.permute.xlu1 %3905 }
 0x4b6   : > { %v3352_v21 = vpop.f32.mrf.mxu2 }
 0x4b7   : > { %v3353_v28 = vadd.f32 %v3352_v21, %v3329_v51 }
 0x4b9   : > { %v3377_v1 = vadd.f32 %v3376_v19, %v3353_v28 }
 0x4bb   : > { %v3401_v38 = vadd.f32 %v3400_v15, %v3377_v1 }
 0x4bc   : > { %v3474_v7 = vpop.f32.mrf.mxu3  ;;  %v3422_v22 = vpop.f32.mrf.mxu1 }
 0x4bd   : > { %v3498_v24 = vpop.f32.mrf.mxu0  ;;  %v3423_v47 = vadd.f32 %v3422_v22, %v3401_v38 }
 0x4be   : > { %v3448_v23 = vpop.f32.mrf.mxu2 }
 0x4bf   : > { %v3475_v40 = vadd.f32 %v3474_v7, %v3448_v23  ;;  %v3571_v56 = vadd.f32 %v3423_v47, %v3250_v50 }
 0x4c1   : > { %v3499_v39 = vadd.f32 %v3498_v24, %v3475_v40 }
 0x4c4   : > { %v3522_v26 = vpop.f32.mrf.mxu1  ;;  %v3568_v20 = vpop.f32.mrf.mxu3 }
 0x4c5   : > { %v3631_v27 = vpop.f32.mrf.mxu0  ;;  %v3523_v37 = vadd.f32 %v3522_v26, %v3499_v39 }
 0x4c6   : > { %v3546_v29 = vpop.f32.mrf.mxu2 }
 0x4c7   : > { %v3547_v61 = vadd.f32 %v3546_v29, %v3523_v37 }
 0x4c9   : > { %v3569_v4 = vadd.f32 %v3568_v20, %v3547_v61 }
 0x4cb   : > { %v3572_v14 = vadd.f32 %v3569_v4, %v3251_v10 }
 0x4cc   : > { %v3657_v33 = vpop.f32.mrf.mxu1  ;;  %v3705_v34 = vpop.f32.mrf.mxu3 }
 0x4cd   : > { %v3658_v42 = vadd.f32 %v3657_v33, %v3631_v27  ;;  %v3729_v36 = vpop.f32.mrf.mxu0 }
 0x4ce   : > { %v3681_v43 = vpop.f32.mrf.mxu2 }
 0x4cf   : > { %v3682_v45 = vadd.f32 %v3681_v43, %v3658_v42 }
 0x4d1   : > { %v3706_v49 = vadd.f32 %v3705_v34, %v3682_v45 }
 0x4d3   : > { %v3730_v54 = vadd.f32 %v3729_v36, %v3706_v49 }
 0x4d4   : > { %v3751_v41 = vpop.f32.mrf.mxu1  ;;  %v3803_v55 = vpop.f32.mrf.mxu3 }
 0x4d5   : > { %v3752_v12 = vadd.f32 %v3751_v41, %v3730_v54  ;;  %v3827_v60 = vpop.f32.mrf.mxu0 }
 0x4d6   : > { %v3777_v57 = vpop.f32.mrf.mxu2 }
 0x4d7   : > { %v3900_v59 = vadd.f32 %v3752_v12, %v3571_v56  ;;  %v3804_v46 = vadd.f32 %v3803_v55, %v3777_v57 }
 0x4d9   : > { %v3908_v62 = vadd.f32 %v3906_v58, %v3900_v59  ;;  %v3828_v31 = vadd.f32 %v3827_v60, %v3804_v46 }
 0x4db   : > { %v3910_v53 = vmax.f32 %v3908_v62, 0.0 }
 0x4dc   : > { %v3851_v2 = vpop.f32.mrf.mxu1  ;;  %v3897_v8 = vpop.f32.mrf.mxu3 }
 0x4dd   : > { %v3914_v6 = vrot.slane %v3910_v53, 4  ;;  %v3852_v9 = vadd.f32 %v3851_v2, %v3828_v31 }
 0x4de   : > { %v3875_v3 = vpop.f32.mrf.mxu2 }
 0x4df   : > { %3918 = vst [vmem:[%s4771_s26] sm:$0xf0] %v3914_v6  ;;  %v3876_v11 = vadd.f32 %v3875_v3, %v3852_v9 }
 0x4e1   : > { %v3898_v17 = vadd.f32 %v3897_v8, %v3876_v11 }
 0x4e3   : > { %v3901_v5 = vadd.f32 %v3898_v17, %v3572_v14 }
 0x4e5   : > { %v3909_v19 = vadd.f32 %v3906_v58, %v3901_v5 }
 0x4e7   : > { %v3911_v16 = vmax.f32 %v3909_v19, 0.0 }
 0x4e9   : > { %v3915_v21 = vrot.slane %v3911_v16, 4 }
 0x4eb   : > { %3919 = vst [vmem:[%s4771_s26 + $0x8] sm:$0xf0] %v3915_v21 }
 0x4ec   : > { %4115 = shalt.err (!%p4112_p3)
}
 0x4ed   : > { %4023 = dma.vmem_to_hbm [thread:$0]  (%p4254_p5), %s3935_s14, 256, %s3937_s18, %s3921_s19  }
 0x4ee PF: > { %p4029_p4 = scmp.ge.s32.totalorder %s4150_s10, 2  ;;  %s3948_s22 = sand.u32 1, %s4138_s29  }
 0x4ef   : > { %s3949_s26 = scalar_lea.sflag [#allocation6], %s3948_s22 }
 0x4f0   : > { %p4026_p7 = pnand %p4029_p4, %p4258_p6 }
 0x4f2   : > { %p4027_p8 = pneg %p4026_p7 }
 0x4f4   : > { %4133 = dma.done.wait (%p4027_p8), %s3949_s26, 256  }
 0x4f5   : > { %4135 = vsyncadd (%p4027_p8), %s3949_s26, 4294967040  ;;  %p19_p9 = scmp.ge.s32.totalorder %s4241_s12, 4   ;;  %s4836_s29 = smov %s4142_s30 }
 0x4f6   : > { %s4837_s30 = smov %s4146_s9  ;;  %s4838_s9 = smov %s4252_s15 }
 0x4f7   : > { %s4839_s10 = smov %s4241_s12  ;;  %21 = sbr.rel (!%p19_p9) target bundleno = 5 (0x5), region = 104 }
 0x4fc   :  { %3955 = vsyncpa [#allocation6], 1 }
 0x4fd   :  { %3957 = vsyncpa [#allocation6 + $0x1], 1 }

</bundles_post_ra>
